<compile_context>
chip_gen: v7x
topology: tpu7x:2x2x1
jax: 0.10.0
libtpu: 0.0.40
codegen_flags: <defaults>
</compile_context>

<pallas_src>
import jax
import jax.numpy as jnp
from jax.experimental import pallas as pl
from jax.experimental.pallas import tpu as pltpu

IN_FEATS = 512 * 3 * 3   # 4608
HIDDEN = 256
OUT_FEATS = 1 * 3 * 3    # 9
OUT_PAD = 128            # lane-dense padded output width


def netg_kernel(x_ref, w1_ref, b1_ref, w2_ref, b2_ref, o_ref):
    # fc1: Dropout (identity in eval) -> Linear -> ReLU.
    # In-kernel f32 -> bf16 cast of x; bf16 x bf16 MXU matmul, f32 accumulation.
    x_bf = x_ref[...].astype(jnp.bfloat16)
    h = jnp.dot(x_bf, w1_ref[...], preferred_element_type=jnp.float32)
    h = jnp.maximum(h + b1_ref[...], 0.0)
    # fc2: Dropout (identity) -> Linear.  bf16 operands, f32 accumulation.
    out = jnp.dot(h.astype(jnp.bfloat16), w2_ref[...],
                  preferred_element_type=jnp.float32)
    o_ref[...] = (out + b2_ref[...]).astype(o_ref.dtype)


def prepare_params(w1, b1, w2, b2):
    """One-time parameter prep -- call ONCE, outside the forward path."""
    w1_bf = w1.astype(jnp.bfloat16)                         # (4608, 256) bf16
    b1_f = b1.reshape(1, HIDDEN).astype(jnp.float32)        # (1, 256) f32
    w2_p = jnp.zeros((HIDDEN, OUT_PAD), jnp.bfloat16).at[:, :OUT_FEATS].set(
        w2.astype(jnp.bfloat16))                            # (256, 128) bf16
    b2_p = jnp.zeros((1, OUT_PAD), jnp.float32).at[:, :OUT_FEATS].set(
        b2.reshape(1, OUT_FEATS).astype(jnp.float32))       # (1, 128) f32
    return w1_bf, b1_f, w2_p, b2_p


def _pick_tm(B):
    """Batch tile: multiple of 16 (bf16 sublane packing), capped at 512,
    and >= 2 grid steps for large B so megacore can shard the batch."""
    if B <= 32:
        return max(16, ((B + 15) // 16) * 16)
    return min(512, ((pl.cdiv(B, 2) + 15) // 16) * 16)


def _resident_spec(shape):
    """Constant-index block: single-buffered (its block never changes across the
    grid, so double-buffering would just burn VMEM).  Fall back to the default
    spec if this Pallas version lacks pipeline_mode / Buffered."""
    try:
        return pl.BlockSpec(shape, lambda i: (0, 0), pipeline_mode=pl.Buffered(1))
    except Exception:  # pragma: no cover - older/odd jax versions
        return pl.BlockSpec(shape, lambda i: (0, 0))


def _netg_forward_impl(x, w1_bf, b1, w2_p, b2_p):
    """x: (B, 4608) f32. Params as produced by prepare_params()."""
    B = x.shape[0]
    TM = _pick_tm(B)
    grid = (pl.cdiv(B, TM),)

    # VMEM budget: double-buffered f32 x tile + in-kernel bf16 copy + resident
    # weights + output tile + h temporaries, with headroom.
    vmem_bytes = int(
        2 * TM * IN_FEATS * 4        # x f32 tile, double-buffered
        + TM * IN_FEATS * 2          # in-kernel bf16 copy of x
        + 2 * TM * OUT_PAD * 4       # output tile, double-buffered
        + IN_FEATS * HIDDEN * 2      # W1 bf16 (single-buffered resident)
        + HIDDEN * OUT_PAD * 2       # W2 bf16 (resident)
        + TM * HIDDEN * 8            # h f32 + bf16 temporaries
        + (1 << 20))                 # slack for small operands / compiler temps
    vmem_limit = min(64 << 20, max(32 << 20, int(vmem_bytes * 1.25)))

    cost = pl.CostEstimate(
        flops=2 * B * IN_FEATS * HIDDEN + 2 * B * HIDDEN * OUT_PAD,
        transcendentals=0,
        bytes_accessed=int(
            B * IN_FEATS * 4             # x (f32)
            + IN_FEATS * HIDDEN * 2      # W1 (bf16)
            + HIDDEN * 4                 # b1
            + HIDDEN * OUT_PAD * 2       # W2 (bf16, padded)
            + OUT_PAD * 4                # b2
            + B * OUT_PAD * 4))          # output

    out = pl.pallas_call(
        netg_kernel,
        out_shape=jax.ShapeDtypeStruct((B, OUT_PAD), jnp.float32),
        grid=grid,
        in_specs=[
            pl.BlockSpec((TM, IN_FEATS), lambda i: (i, 0)),  # x tile (f32)
            _resident_spec((IN_FEATS, HIDDEN)),              # W1 (bf16)
            _resident_spec((1, HIDDEN)),                     # b1 (f32)
            _resident_spec((HIDDEN, OUT_PAD)),               # W2 (bf16, padded)
            _resident_spec((1, OUT_PAD)),                    # b2 (f32, padded)
        ],
        out_specs=pl.BlockSpec((TM, OUT_PAD), lambda i: (i, 0)),
        compiler_params=pltpu.CompilerParams(
            dimension_semantics=("parallel",),
            vmem_limit_bytes=vmem_limit),
        cost_estimate=cost,
    )(x, w1_bf, b1, w2_p, b2_p)

    # Drop the lane padding (no batch slice needed: out_shape already (B, 128)).
    return out[:, :OUT_FEATS]


netg_forward = jax.jit(_netg_forward_impl)


def init_params(key):
    """Deterministic Linear-style init (uniform in +/- 1/sqrt(fan_in)).
    Weights stored as (in_features, out_features) == PyTorch weight.T."""
    k1, k2, k3, k4 = jax.random.split(key, 4)
    bound1 = 1.0 / (IN_FEATS ** 0.5)
    bound2 = 1.0 / (HIDDEN ** 0.5)
    w1 = jax.random.uniform(k1, (IN_FEATS, HIDDEN), jnp.float32, -bound1, bound1)
    b1 = jax.random.uniform(k2, (1, HIDDEN), jnp.float32, -bound1, bound1)
    w2 = jax.random.uniform(k3, (HIDDEN, OUT_FEATS), jnp.float32, -bound2, bound2)
    b2 = jax.random.uniform(k4, (1, OUT_FEATS), jnp.float32, -bound2, bound2)
    return w1, b1, w2, b2


if __name__ == "__main__":
    key = jax.random.PRNGKey(0)
    kx, kp = jax.random.split(key)
    B = 2
    x = jax.random.normal(kx, (B, IN_FEATS), jnp.float32)
    w1, b1, w2, b2 = init_params(kp)

    # One-time parameter prep, hoisted out of the forward path.
    params = prepare_params(w1, b1, w2, b2)

    out = netg_forward(x, *params)
    out = jax.block_until_ready(out)

    # Reference mirroring the kernel's bf16 operand quantization (isolates
    # kernel correctness from the intended low-precision operand choice).
    h_ref = jnp.maximum(
        jnp.dot(x.astype(jnp.bfloat16), w1.astype(jnp.bfloat16),
                preferred_element_type=jnp.float32) + b1, 0.0)
    ref = jnp.dot(h_ref.astype(jnp.bfloat16), w2.astype(jnp.bfloat16),
                  preferred_element_type=jnp.float32) + b2

    assert out.shape == (B, OUT_FEATS)
    assert jnp.allclose(out, ref, atol=2e-3, rtol=2e-3), (
        float(jnp.max(jnp.abs(out - ref))))
    print("KERNEL_OK")
</pallas_src>

<mosaic_0001>
module attributes {stable_mosaic.version = 11 : i64} {
  func.func @netg_kernel(%arg0: i32, %arg1: memref<16x4608xf32, #tpu.memory_space<vmem>>, %arg2: memref<4608x256xbf16, #tpu.memory_space<vmem>>, %arg3: memref<1x256xf32, #tpu.memory_space<vmem>>, %arg4: memref<256x128xbf16, #tpu.memory_space<vmem>>, %arg5: memref<1x128xf32, #tpu.memory_space<vmem>>, %arg6: memref<16x128xf32, #tpu.memory_space<vmem>>) attributes {dimension_semantics = [#tpu.dimension_semantics<parallel>], iteration_bounds = array<i64: 1>, scalar_prefetch = 0 : i64, scratch_operands = 0 : i64, tpu.core_type = #tpu.core_type<tc>, window_params = [{transform_indices = @transform_0, window_bounds = array<i64: 16, 4608>}, {pipeline_mode = #tpu.pipeline_mode<synchronous>, transform_indices = @transform_1, window_bounds = array<i64: 4608, 256>}, {pipeline_mode = #tpu.pipeline_mode<synchronous>, transform_indices = @transform_2, window_bounds = array<i64: 1, 256>}, {pipeline_mode = #tpu.pipeline_mode<synchronous>, transform_indices = @transform_3, window_bounds = array<i64: 256, 128>}, {pipeline_mode = #tpu.pipeline_mode<synchronous>, transform_indices = @transform_4, window_bounds = array<i64: 1, 128>}, {transform_indices = @transform_5, window_bounds = array<i64: 16, 128>}]} {
    %c0 = arith.constant 0 : index
    %c0_0 = arith.constant 0 : index
    %0 = vector.load %arg1[%c0, %c0_0] : memref<16x4608xf32, #tpu.memory_space<vmem>>, vector<16x4608xf32>
    %1 = arith.truncf %0 : vector<16x4608xf32> to vector<16x4608xbf16>
    %c0_1 = arith.constant 0 : index
    %c0_2 = arith.constant 0 : index
    %2 = vector.load %arg2[%c0_1, %c0_2] : memref<4608x256xbf16, #tpu.memory_space<vmem>>, vector<4608x256xbf16>
    %cst = arith.constant dense<0.000000e+00> : vector<16x256xf32>
    %3 = tpu.matmul %1, %2, %cst {dimension_numbers = #tpu.dot_dimension_numbers<[1], [0], [0], [1], [0, 0, 1, 1], [], []>} : vector<16x4608xbf16>, vector<4608x256xbf16>, vector<16x256xf32> -> vector<16x256xf32>
    %c0_3 = arith.constant 0 : index
    %c0_4 = arith.constant 0 : index
    %4 = vector.load %arg3[%c0_3, %c0_4] : memref<1x256xf32, #tpu.memory_space<vmem>>, vector<1x256xf32>
    %5 = vector.broadcast %4 : vector<1x256xf32> to vector<16x256xf32>
    %6 = arith.addf %3, %5 : vector<16x256xf32>
    %cst_5 = arith.constant 0.000000e+00 : f32
    %7 = vector.broadcast %cst_5 : f32 to vector<16x256xf32>
    %8 = arith.maximumf %6, %7 : vector<16x256xf32>
    %9 = arith.truncf %8 : vector<16x256xf32> to vector<16x256xbf16>
    %c0_6 = arith.constant 0 : index
    %c0_7 = arith.constant 0 : index
    %10 = vector.load %arg4[%c0_6, %c0_7] : memref<256x128xbf16, #tpu.memory_space<vmem>>, vector<256x128xbf16>
    %cst_8 = arith.constant dense<0.000000e+00> : vector<16x128xf32>
    %11 = tpu.matmul %9, %10, %cst_8 {dimension_numbers = #tpu.dot_dimension_numbers<[1], [0], [0], [1], [0, 0, 1, 1], [], []>} : vector<16x256xbf16>, vector<256x128xbf16>, vector<16x128xf32> -> vector<16x128xf32>
    %c0_9 = arith.constant 0 : index
    %c0_10 = arith.constant 0 : index
    %12 = vector.load %arg5[%c0_9, %c0_10] : memref<1x128xf32, #tpu.memory_space<vmem>>, vector<1x128xf32>
    %13 = vector.broadcast %12 : vector<1x128xf32> to vector<16x128xf32>
    %14 = arith.addf %11, %13 : vector<16x128xf32>
    %c0_11 = arith.constant 0 : index
    %c0_12 = arith.constant 0 : index
    %15 = vector.load %arg6[%c0_11, %c0_12] : memref<16x128xf32, #tpu.memory_space<vmem>>, vector<16x128xf32>
    tpu.vector_store %arg6[%c0_11, %c0_12], %14 {strides = array<i32>} : memref<16x128xf32, #tpu.memory_space<vmem>>, vector<16x128xf32>,
    return
  }
  func.func @transform_0(%arg0: i32) -> (i32, i32) {
    %c0_i32 = arith.constant 0 : i32
    %c0_i32_0 = arith.constant 0 : i32
    return %arg0, %c0_i32 : i32, i32
  }
  func.func @transform_1(%arg0: i32) -> (i32, i32) {
    %c0_i32 = arith.constant 0 : i32
    %c0_i32_0 = arith.constant 0 : i32
    %c0_i32_1 = arith.constant 0 : i32
    return %c0_i32, %c0_i32_0 : i32, i32
  }
  func.func @transform_2(%arg0: i32) -> (i32, i32) {
    %c0_i32 = arith.constant 0 : i32
    %c0_i32_0 = arith.constant 0 : i32
    %c0_i32_1 = arith.constant 0 : i32
    return %c0_i32, %c0_i32_0 : i32, i32
  }
  func.func @transform_3(%arg0: i32) -> (i32, i32) {
    %c0_i32 = arith.constant 0 : i32
    %c0_i32_0 = arith.constant 0 : i32
    %c0_i32_1 = arith.constant 0 : i32
    return %c0_i32, %c0_i32_0 : i32, i32
  }
  func.func @transform_4(%arg0: i32) -> (i32, i32) {
    %c0_i32 = arith.constant 0 : i32
    %c0_i32_0 = arith.constant 0 : i32
    %c0_i32_1 = arith.constant 0 : i32
    return %c0_i32, %c0_i32_0 : i32, i32
  }
  func.func @transform_5(%arg0: i32) -> (i32, i32) {
    %c0_i32 = arith.constant 0 : i32
    %c0_i32_0 = arith.constant 0 : i32
    return %arg0, %c0_i32 : i32, i32
  }
}

</mosaic_0001>

<bundles_post_ra>
// kernel: _netg_forward_impl.1
= control target key start
LH: loop header
LB: loop body
LE: loop exit
PB: predicated region body
PF: predicated region fallthrough
CT: control target
= control target key end

     0   :  { %10 = vsyncpa [#allocation3], 0  ;;  %s7713_s0 = inlined_call_operand.hbm [shape: f32[2,4608], index: 0, kind: input, shape index: {}]   ;;  %s7714_s1 = inlined_call_operand.hbm [shape: bf16[4608,256], index: 1, kind: input, shape index: {}]   ;;  %s7715_s2 = inlined_call_operand.hbm [shape: f32[1,256], index: 2, kind: input, shape index: {}]   ;;  %s7716_s3 = inlined_call_operand.hbm [shape: bf16[256,128], index: 3, kind: input, shape index: {}]   ;;  %s7717_s4 = inlined_call_operand.hbm [shape: f32[1,128], index: 4, kind: input, shape index: {}]   ;;  %s7718_s5 = inlined_call_operand.hbm [shape: f32[2,128], index: 5, kind: output, shape index: {}]  }
   0x1   :  { %11 = vsyncpa [#allocation6], 0 }
   0x2   :  { %12 = vsyncpa [#allocation9], 0 }
   0x3   :  { %13 = vsyncpa [#allocation4], 0 }
   0x4   :  { %18 = vsyncadd [#allocation3], 8064  ;;  %s7261_s18 = smov [#allocation5]   ;;  %s7121_s22 = scalar_lea.hbm %s7714_s1, 73728 }
   0x5   :  { %s31_s19 = sshll.u32 %s7261_s18, 4  ;;  %p7122_p0 = scmp.ne.s32.totalorder %s7714_s1, %s7121_s22  ;;  %s32_s19 = int_to_ptr.vmem [resolvable:$true] %s31_s19 }
   0x6   :  { %p7125_p1 = scmp.lt.u32.totalorder %s7121_s22, %s7714_s1 }
   0x8   :  { %p7127_p2 = pnand %p7125_p1, %p7122_p0 }
   0xa   :  { %7130 = shalt.err (!%p7127_p2)
}
   0xb   :  { %s7131_s27 = scalar_lea.vmem %s32_s19, 73728  ;;  %p7136_p4 = scmp.lt.s32.totalorder %s32_s19, %s32_s19 }
   0xc   :  { %p7132_p3 = scmp.ne.s32.totalorder %s32_s19, %s7131_s27  ;;  %p7137_p5 = scmp.lt.s32.totalorder %s7131_s27, %s7131_s27 }
   0xe   :  { %p7138_p6 = por %p7137_p5, %p7136_p4 }
  0x10   :  { %p7139_p7 = pnand %p7138_p6, %p7132_p3 }
  0x12   :  { %7142 = shalt.err (!%p7139_p7)
}
  0x13   :  { %s7262_s28 = smov 128   ;;  %s7263_s29 = smov 8  }
  0x14   :  { %37 = dma.hbm_to_vmem [thread:$0]  %s7714_s1, 73728, %s32_s19, [#allocation6], %s7262_s28, %s7262_s28, %s7263_s29  }
  0x15   :  { %s7264_s7 = smov [#allocation8]   ;;  %s7143_s11 = scalar_lea.hbm %s7716_s3, 2048 }
  0x16   :  { %s53_s8 = sshll.u32 %s7264_s7, 4  ;;  %p7144_p8 = scmp.ne.s32.totalorder %s7716_s3, %s7143_s11  ;;  %s54_s8 = int_to_ptr.vmem [resolvable:$true] %s53_s8 }
  0x17   :  { %p7147_p9 = scmp.lt.u32.totalorder %s7143_s11, %s7716_s3 }
  0x19   :  { %p7149_p10 = pnand %p7147_p9, %p7144_p8 }
  0x1b   :  { %7152 = shalt.err (!%p7149_p10)
}
  0x1c   :  { %s7153_s16 = scalar_lea.vmem %s54_s8, 2048  ;;  %p7158_p12 = scmp.lt.s32.totalorder %s54_s8, %s54_s8 }
  0x1d   :  { %p7154_p11 = scmp.ne.s32.totalorder %s54_s8, %s7153_s16  ;;  %p7159_p13 = scmp.lt.s32.totalorder %s7153_s16, %s7153_s16 }
  0x1f   :  { %p7160_p0 = por %p7159_p13, %p7158_p12 }
  0x21   :  { %p7161_p1 = pnand %p7160_p0, %p7154_p11 }
  0x23   :  { %7164 = shalt.err (!%p7161_p1)
}
  0x24   :  { %s7265_s1 = smov 64   ;;  %s7266_s17 = smov 4  }
  0x25   :  { %59 = dma.hbm_to_vmem [thread:$0]  %s7716_s3, 2048, %s54_s8, [#allocation9], %s7265_s1, %s7265_s1, %s7266_s17  }
  0x26   :  { %s7267_s20 = smov [#allocation2]   ;;  %s7165_s24 = scalar_lea.hbm %s7713_s0, 1152 }
  0x27   :  { %s19_s21 = sshll.u32 %s7267_s20, 4  ;;  %p7166_p2 = scmp.ne.s32.totalorder %s7713_s0, %s7165_s24  ;;  %s20_s21 = int_to_ptr.vmem [resolvable:$true] %s19_s21 }
  0x28   :  { %p7169_p3 = scmp.lt.u32.totalorder %s7165_s24, %s7713_s0 }
  0x2a   :  { %p7171_p4 = pnand %p7169_p3, %p7166_p2 }
  0x2c   :  { %7174 = shalt.err (!%p7171_p4)
}
  0x2d   :  { %s7175_s29 = scalar_lea.vmem %s20_s21, 1152  ;;  %s7179_s3 = scalar_lea.vmem %s20_s21, 9216 }
  0x2e   :  { %p7176_p5 = scmp.ne.s32.totalorder %s20_s21, %s7175_s29  ;;  %p7180_p6 = scmp.lt.s32.totalorder %s20_s21, %s20_s21 }
  0x2f   :  { %p7181_p7 = scmp.lt.s32.totalorder %s7179_s3, %s7175_s29 }
  0x31   :  { %p7182_p8 = por %p7181_p7, %p7180_p6 }
  0x33   :  { %p7183_p9 = pnand %p7182_p8, %p7176_p5 }
  0x35   :  { %7186 = shalt.err (!%p7183_p9)
}
  0x36   :  { %s7268_s30 = smov 1152   ;;  %s7269_s6 = smov 72  }
  0x37   :  { %25 = dma.hbm_to_vmem [thread:$0]  %s7713_s0, 1152, %s20_s21, [#allocation3], %s7268_s30, %s7268_s30, %s7269_s6  }
  0x38   :  { %s7270_s9 = smov [#allocation7]   ;;  %s7271_s11 = smov [#allocation10]  }
  0x39   :  { %s44_s10 = sshll.u32 %s7270_s9, 4  ;;  %s66_s12 = sshll.u32 %s7271_s11, 4  ;;  %s45_s10 = int_to_ptr.vmem [resolvable:$true] %s44_s10  ;;  %s67_s12 = int_to_ptr.vmem [resolvable:$true] %s66_s12 }
  0x3a   :  { %s7187_s15 = scalar_lea.hbm %s7715_s2, 32 }
  0x3b   :  { %p7188_p10 = scmp.ne.s32.totalorder %s7715_s2, %s7187_s15  ;;  %p7191_p11 = scmp.lt.u32.totalorder %s7187_s15, %s7715_s2 }
  0x3d   :  { %p7193_p12 = pnand %p7191_p11, %p7188_p10 }
  0x3f   :  { %7196 = shalt.err (!%p7193_p12)
}
  0x40   :  { %s7197_s0 = scalar_lea.vmem %s45_s10, 32  ;;  %p7202_p0 = scmp.lt.s32.totalorder %s45_s10, %s45_s10 }
  0x41   :  { %p7198_p13 = scmp.ne.s32.totalorder %s45_s10, %s7197_s0  ;;  %p7203_p1 = scmp.lt.s32.totalorder %s7197_s0, %s7197_s0 }
  0x43   :  { %p7204_p2 = por %p7203_p1, %p7202_p0 }
  0x45   :  { %p7205_p3 = pnand %p7204_p2, %p7198_p13 }
  0x47   :  { %7208 = shalt.err (!%p7205_p3)
}
  0x48   :  { %47 = dma.hbm_to_vmem [thread:$0]  %s7715_s2, 32, %s45_s10, [#allocation6]  }
  0x49   :  { %s7209_s23 = scalar_lea.hbm %s7717_s4, 16 }
  0x4a   :  { %p7210_p4 = scmp.ne.s32.totalorder %s7717_s4, %s7209_s23  ;;  %p7213_p5 = scmp.lt.u32.totalorder %s7209_s23, %s7717_s4 }
  0x4c   :  { %p7215_p6 = pnand %p7213_p5, %p7210_p4 }
  0x4e   :  { %7218 = shalt.err (!%p7215_p6)
}
  0x4f   :  { %s7219_s28 = scalar_lea.vmem %s67_s12, 16  ;;  %s7223_s29 = scalar_lea.vmem %s67_s12, 32 }
  0x50   :  { %p7220_p7 = scmp.ne.s32.totalorder %s67_s12, %s7219_s28  ;;  %p7224_p8 = scmp.lt.s32.totalorder %s67_s12, %s67_s12 }
  0x51   :  { %p7225_p9 = scmp.lt.s32.totalorder %s7223_s29, %s7219_s28 }
  0x53   :  { %p7226_p10 = por %p7225_p9, %p7224_p8 }
  0x55   :  { %p7227_p11 = pnand %p7226_p10, %p7220_p7 }
  0x57   :  { %7230 = shalt.err (!%p7227_p11)
}
  0x58   :  { %69 = dma.hbm_to_vmem [thread:$0]  %s7717_s4, 16, %s67_s12, [#allocation9]  }
  0x59   :  { %7253 = dma.done.wait [#allocation3], 9216  }
  0x5a   :  { %7254 = vsyncadd [#allocation3], 4294958080 }
  0x5b   :  { %7255 = dma.done.wait [#allocation6], 73760  }
  0x5c   :  { %7256 = vsyncadd [#allocation6], 4294893536 }
  0x5d   :  { %7257 = dma.done.wait [#allocation9], 2064  }
  0x5e   :  { %7258 = vsyncadd [#allocation9], 4294965232  ;;  %v6133_v0 = vld [vmem:[#allocation5 + $0x4] ss:$8 sps:$4 sm:$0xff]   ;;  %v6137_v2 = vld [vmem:[#allocation5] ss:$8 sps:$4 sm:$0xff]   ;;  %v237_v41 = vlaneseq }
  0x5f   :  { %v6135_v1 = vld [vmem:[#allocation5 + $0x904] ss:$8 sps:$4 sm:$0xff]   ;;  %4454 = vmatprep.subr.bf16.mxu1 %v6133_v0  ;;  %v6138_v3 = vld [vmem:[#allocation5 + $0x900] ss:$8 sps:$4 sm:$0xff]   ;;  %v6139_v4 = vld [vmem:[#allocation5 + $0x14] ss:$8 sps:$4 sm:$0xff]  }
  0x60   :  { %4841 = vmatprep.subr.bf16.mxu0 %v6135_v1  ;;  %4455 = vmatpush1.bf16.msra.mxu1 %v6137_v2  ;;  %v6141_v5 = vld [vmem:[#allocation5 + $0x914] ss:$8 sps:$4 sm:$0xff]   ;;  %v6143_v6 = vld [vmem:[#allocation5 + $0x10] ss:$8 sps:$4 sm:$0xff]   ;;  %v6145_v8 = vld [vmem:[#allocation5 + $0x24] ss:$8 sps:$4 sm:$0xff]  }
  0x61   :  { %4842 = vmatpush1.bf16.msra.mxu0 %v6138_v3  ;;  %4456 = vmatprep.subr.bf16.mxu1 %v6139_v4  ;;  %v6144_v7 = vld [vmem:[#allocation5 + $0x910] ss:$8 sps:$4 sm:$0xff]   ;;  %v6147_v9 = vld [vmem:[#allocation5 + $0x924] ss:$8 sps:$4 sm:$0xff]   ;;  %v6149_v10 = vld [vmem:[#allocation5 + $0x20] ss:$8 sps:$4 sm:$0xff]  }
  0x62   :  { %4843 = vmatprep.subr.bf16.mxu0 %v6141_v5  ;;  %v6150_v11 = vld [vmem:[#allocation5 + $0x920] ss:$8 sps:$4 sm:$0xff]   ;;  %v6151_v12 = vld [vmem:[#allocation5 + $0x34] ss:$8 sps:$4 sm:$0xff]   ;;  %v6155_v14 = vld [vmem:[#allocation5 + $0x30] ss:$8 sps:$4 sm:$0xff]  }
  0x63   :  { %v6153_v13 = vld [vmem:[#allocation5 + $0x934] ss:$8 sps:$4 sm:$0xff]   ;;  %v6156_v15 = vld [vmem:[#allocation5 + $0x930] ss:$8 sps:$4 sm:$0xff]   ;;  %v6157_v16 = vld [vmem:[#allocation5 + $0x44] ss:$8 sps:$4 sm:$0xff]  }
  0x64   :  { %4457 = vmatpush1.bf16.msra.mxu1 %v6143_v6  ;;  %v6159_v17 = vld [vmem:[#allocation5 + $0x944] ss:$8 sps:$4 sm:$0xff]   ;;  %v6161_v18 = vld [vmem:[#allocation5 + $0x40] ss:$8 sps:$4 sm:$0xff]   ;;  %v6163_v20 = vld [vmem:[#allocation5 + $0x54] ss:$8 sps:$4 sm:$0xff]  }
  0x65   :  { %4844 = vmatpush1.bf16.msra.mxu0 %v6144_v7  ;;  %4458 = vmatprep.subr.bf16.mxu1 %v6145_v8  ;;  %v6162_v19 = vld [vmem:[#allocation5 + $0x940] ss:$8 sps:$4 sm:$0xff]   ;;  %v6165_v21 = vld [vmem:[#allocation5 + $0x954] ss:$8 sps:$4 sm:$0xff]   ;;  %v6167_v22 = vld [vmem:[#allocation5 + $0x50] ss:$8 sps:$4 sm:$0xff]  }
  0x66   :  { %4845 = vmatprep.subr.bf16.mxu0 %v6147_v9  ;;  %v6168_v23 = vld [vmem:[#allocation5 + $0x950] ss:$8 sps:$4 sm:$0xff]   ;;  %v6169_v24 = vld [vmem:[#allocation5 + $0x64] ss:$8 sps:$4 sm:$0xff]   ;;  %v6173_v26 = vld [vmem:[#allocation5 + $0x60] ss:$8 sps:$4 sm:$0xff]  }
  0x67   :  { %v6171_v25 = vld [vmem:[#allocation5 + $0x964] ss:$8 sps:$4 sm:$0xff]   ;;  %v6174_v27 = vld [vmem:[#allocation5 + $0x960] ss:$8 sps:$4 sm:$0xff]   ;;  %v6175_v28 = vld [vmem:[#allocation5 + $0x74] ss:$8 sps:$4 sm:$0xff]  }
  0x68   :  { %4459 = vmatpush1.bf16.msra.mxu1 %v6149_v10  ;;  %v6177_v29 = vld [vmem:[#allocation5 + $0x974] ss:$8 sps:$4 sm:$0xff]   ;;  %v6179_v30 = vld [vmem:[#allocation5 + $0x70] ss:$8 sps:$4 sm:$0xff]   ;;  %v6181_v32 = vld [vmem:[#allocation5 + $0x84] ss:$8 sps:$4 sm:$0xff]  }
  0x69   :  { %4846 = vmatpush1.bf16.msra.mxu0 %v6150_v11  ;;  %4460 = vmatprep.subr.bf16.mxu1 %v6151_v12  ;;  %v6180_v31 = vld [vmem:[#allocation5 + $0x970] ss:$8 sps:$4 sm:$0xff]   ;;  %v6183_v33 = vld [vmem:[#allocation5 + $0x984] ss:$8 sps:$4 sm:$0xff]   ;;  %v6185_v34 = vld [vmem:[#allocation5 + $0x80] ss:$8 sps:$4 sm:$0xff]  }
  0x6a   :  { %4847 = vmatprep.subr.bf16.mxu0 %v6153_v13  ;;  %v6186_v35 = vld [vmem:[#allocation5 + $0x980] ss:$8 sps:$4 sm:$0xff]   ;;  %v6187_v36 = vld [vmem:[#allocation5 + $0x94] ss:$8 sps:$4 sm:$0xff]   ;;  %v6191_v38 = vld [vmem:[#allocation5 + $0x90] ss:$8 sps:$4 sm:$0xff]  }
  0x6b   :  { %v6189_v37 = vld [vmem:[#allocation5 + $0x994] ss:$8 sps:$4 sm:$0xff]   ;;  %v7272_v39 = vmov 1983009808   ;;  %v6192_v42 = vld [vmem:[#allocation5 + $0x990] ss:$8 sps:$4 sm:$0xff]  }
  0x6c   :  { %4461 = vmatpush1.bf16.msra.mxu1 %v6155_v14  ;;  %v235_v40 = vunpack.c.l.s4 %v7272_v39  ;;  %v6193_v43 = vld [vmem:[#allocation5 + $0xa4] ss:$8 sps:$4 sm:$0xff]   ;;  %v6197_v45 = vld [vmem:[#allocation5 + $0xa0] ss:$8 sps:$4 sm:$0xff]   ;;  %v7366_v48 = vshrl.u32 %v237_v41, 7 }
  0x6d   :  { %4848 = vmatpush1.bf16.msra.mxu0 %v6156_v15  ;;  %4462 = vmatprep.subr.bf16.mxu1 %v6157_v16  ;;  %v6195_v44 = vld [vmem:[#allocation5 + $0x9a4] ss:$8 sps:$4 sm:$0xff]   ;;  %v6198_v46 = vld [vmem:[#allocation5 + $0x9a0] ss:$8 sps:$4 sm:$0xff]   ;;  %v6199_v49 = vld [vmem:[#allocation5 + $0xb4] ss:$8 sps:$4 sm:$0xff]  }
  0x6e   :  { %4849 = vmatprep.subr.bf16.mxu0 %v6159_v17  ;;  %v236_v47 = vunpack.c.0.s8 %v235_v40  ;;  %v6201_v50 = vld [vmem:[#allocation5 + $0x9b4] ss:$8 sps:$4 sm:$0xff]   ;;  %v6203_v51 = vld [vmem:[#allocation5 + $0xb0] ss:$8 sps:$4 sm:$0xff]   ;;  %v6205_v53 = vld [vmem:[#allocation5 + $0xc4] ss:$8 sps:$4 sm:$0xff]  }
  0x6f   :  { %v6204_v52 = vld [vmem:[#allocation5 + $0x9b0] ss:$8 sps:$4 sm:$0xff]   ;;  %v6207_v55 = vld [vmem:[#allocation5 + $0x9c4] ss:$8 sps:$4 sm:$0xff]   ;;  %v6229_v56 = vld [vmem:[#allocation2] ss:$72 sps:$4 sm:$0xff]  }
  0x70   :  { %4463 = vmatpush1.bf16.msra.mxu1 %v6161_v18  ;;  %v7369_v54 = vsub.s32 %v236_v47, %v7366_v48  ;;  %v6232_v57 = vld [vmem:[#allocation2 + $0x90] ss:$72 sps:$4 sm:$0xff]   ;;  %v6235_v58 = vld [vmem:[#allocation2 + $0x120] ss:$72 sps:$4 sm:$0xff]   ;;  %v6211_v63 = vld [vmem:[#allocation5 + $0xd4] ss:$8 sps:$4 sm:$0xff]  }
  0x71   :  { %4850 = vmatpush1.bf16.msra.mxu0 %v6162_v19  ;;  %4464 = vmatprep.subr.bf16.mxu1 %v6163_v20  ;;  %v6209_v59 = vld [vmem:[#allocation5 + $0xc0] ss:$8 sps:$4 sm:$0xff]   ;;  %v6238_v62 = vld [vmem:[#allocation2 + $0x1b0] ss:$72 sps:$4 sm:$0xff]   ;;  %v6213_v2 = vld [vmem:[#allocation5 + $0x9d4] ss:$8 sps:$4 sm:$0xff]  }
  0x72   :  { %4851 = vmatprep.subr.bf16.mxu0 %v6165_v21  ;;  %v6210_v60 = vld [vmem:[#allocation5 + $0x9c0] ss:$8 sps:$4 sm:$0xff]   ;;  %v7372_v61 = vrot.slane %v6229_v56, %v7369_v54  ;;  %v7375_v0 = vrot.slane %v6232_v57, %v7369_v54  ;;  %v564_v1 = vrot.slane %v6235_v58, %v7369_v54  ;;  %v578_v3 = vrot.slane %v6238_v62, %v7369_v54  ;;  %v6215_v4 = vld [vmem:[#allocation5 + $0xd0] ss:$8 sps:$4 sm:$0xff]   ;;  %v6217_v7 = vld [vmem:[#allocation5 + $0xe4] ss:$8 sps:$4 sm:$0xff]  }
  0x73   :  { %v6216_v5 = vld [vmem:[#allocation5 + $0x9d0] ss:$8 sps:$4 sm:$0xff]   ;;  %v6219_v8 = vld [vmem:[#allocation5 + $0x9e4] ss:$8 sps:$4 sm:$0xff]   ;;  %v6234_v11 = vld [vmem:[#allocation2 + $0x94] ss:$72 sps:$4 sm:$0xff]  }
  0x74   :  { %4465 = vmatpush1.bf16.msra.mxu1 %v6167_v22  ;;  %v263_v6 = vcombine.high %v7372_v61, %v7375_v0  ;;  %v587_v9 = vcombine.high %v564_v1, %v578_v3  ;;  %v6231_v10 = vld [vmem:[#allocation2 + $0x4] ss:$72 sps:$4 sm:$0xff]   ;;  %v6249_v15 = vld [vmem:[#allocation2 + $0xb4] ss:$72 sps:$4 sm:$0xff]   ;;  %v6221_v20 = vld [vmem:[#allocation5 + $0xe0] ss:$8 sps:$4 sm:$0xff]  }
  0x75   :  { %4852 = vmatpush1.bf16.msra.mxu0 %v6168_v23  ;;  %4466 = vmatprep.subr.bf16.mxu1 %v6169_v24  ;;  %v6246_v12 = vld [vmem:[#allocation2 + $0x24] ss:$72 sps:$4 sm:$0xff]   ;;  %v6240_v17 = vld [vmem:[#allocation2 + $0x1b4] ss:$72 sps:$4 sm:$0xff]   ;;  %v6222_v21 = vld [vmem:[#allocation5 + $0x9e0] ss:$8 sps:$4 sm:$0xff]   ;;  %v405_v22 = vrot.slane %v6249_v15, %v7369_v54 }
  0x76   :  { %4853 = vmatprep.subr.bf16.mxu0 %v6171_v25  ;;  %v6237_v13 = vld [vmem:[#allocation2 + $0x124] ss:$72 sps:$4 sm:$0xff]   ;;  %v951_v14 = vpack.c.bf16 %v587_v9, %v263_v6  ;;  %v391_v18 = vrot.slane %v6246_v12, %v7369_v54  ;;  %v6255_v19 = vld [vmem:[#allocation2 + $0x1d4] ss:$72 sps:$4 sm:$0xff]   ;;  %v6265_v57 = vld [vmem:[#allocation5 + $0x120] ss:$8 sps:$4 sm:$0xff]  }
  0x77   :  { %v6252_v16 = vld [vmem:[#allocation2 + $0x144] ss:$72 sps:$4 sm:$0xff]   ;;  %v6223_v24 = vld [vmem:[#allocation5 + $0xf4] ss:$8 sps:$4 sm:$0xff]   ;;  %v729_v25 = vrot.slane %v6255_v19, %v7369_v54  ;;  %v6268_v58 = vld [vmem:[#allocation5 + $0xa20] ss:$8 sps:$4 sm:$0xff]  }
  0x78   :  { %4467 = vmatpush1.bf16.msra.mxu1 %v6173_v26  ;;  %4486 = vmatprep.mubr.bf16.mxu1 %v951_v14  ;;  %v715_v23 = vrot.slane %v6252_v16, %v7369_v54  ;;  %v6225_v26 = vld [vmem:[#allocation5 + $0x9f4] ss:$8 sps:$4 sm:$0xff]   ;;  %v6243_v39 = vld [vmem:[#allocation5 + $0x104] ss:$8 sps:$4 sm:$0xff]   ;;  %v6274_v62 = vld [vmem:[#allocation5 + $0xa30] ss:$8 sps:$4 sm:$0xff]  }
  0x79   :  { %4854 = vmatpush1.bf16.msra.mxu0 %v6174_v27  ;;  %4468 = vmatprep.subr.bf16.mxu1 %v6175_v28  ;;  %v409_v27 = vcombine.high %v391_v18, %v405_v22  ;;  %v7386_v28 = vrot.slane %v6231_v10, %v7369_v54  ;;  %v6258_v41 = vld [vmem:[#allocation5 + $0xa04] ss:$8 sps:$4 sm:$0xff]   ;;  %v6286_v6 = vld [vmem:[#allocation5 + $0xa50] ss:$8 sps:$4 sm:$0xff]   ;;  %v6289_v9 = vld [vmem:[#allocation5 + $0x160] ss:$8 sps:$4 sm:$0xff]  }
  0x7a   :  { %4855 = vmatprep.subr.bf16.mxu0 %v6177_v29  ;;  %v733_v29 = vcombine.high %v715_v23, %v729_v25  ;;  %v6270_v56 = vld [vmem:[#allocation5 + $0xa24] ss:$8 sps:$4 sm:$0xff]   ;;  %v6292_v10 = vld [vmem:[#allocation5 + $0xa60] ss:$8 sps:$4 sm:$0xff]   ;;  %v6300_v12 = vld [vmem:[#allocation5 + $0xa74] ss:$8 sps:$4 sm:$0xff]  }
  0x7b   :  { %v6298_v14 = vld [vmem:[#allocation5 + $0xa70] ss:$8 sps:$4 sm:$0xff]   ;;  %v6303_v15 = vld [vmem:[#allocation5 + $0x184] ss:$8 sps:$4 sm:$0xff]   ;;  %v6309_v19 = vld [vmem:[#allocation5 + $0x194] ss:$8 sps:$4 sm:$0xff]  }
  0x7c   :  { %4469 = vmatpush1.bf16.msra.mxu1 %v6179_v30  ;;  %v7389_v30 = vrot.slane %v6234_v11, %v7369_v54  ;;  %v969_v40 = vpack.c.bf16 %v733_v29, %v409_v27  ;;  %v6297_v11 = vld [vmem:[#allocation5 + $0x174] ss:$8 sps:$4 sm:$0xff]   ;;  %v6306_v16 = vld [vmem:[#allocation5 + $0xa84] ss:$8 sps:$4 sm:$0xff]   ;;  %v6356_v27 = vld [vmem:[#allocation2 + $0x148] ss:$72 sps:$4 sm:$0xff]  }
  0x7d   :  { %4856 = vmatpush1.bf16.msra.mxu0 %v6180_v31  ;;  %4470 = vmatprep.subr.bf16.mxu1 %v6181_v32  ;;  %v7392_v31 = vrot.slane %v6237_v13, %v7369_v54  ;;  %v7395_v32 = vrot.slane %v6240_v17, %v7369_v54  ;;  %v6295_v13 = vld [vmem:[#allocation5 + $0x170] ss:$8 sps:$4 sm:$0xff]   ;;  %v6301_v17 = vld [vmem:[#allocation5 + $0x180] ss:$8 sps:$4 sm:$0xff]  }
  0x7e   :  { %4857 = vmatprep.subr.bf16.mxu0 %v6183_v33  ;;  %v6227_v33 = vld [vmem:[#allocation5 + $0xf0] ss:$8 sps:$4 sm:$0xff]   ;;  %4873 = vmatprep.mubr.bf16.mxu0 %v969_v40 }
  0x7f   :  { %v6358_v29 = vld [vmem:[#allocation2 + $0x1d8] ss:$72 sps:$4 sm:$0xff]  }
  0x80   :  { %4471 = vmatpush1.bf16.msra.mxu1 %v6185_v34  ;;  %v6228_v34 = vld [vmem:[#allocation5 + $0x9f0] ss:$8 sps:$4 sm:$0xff]  }
  0x81   :  { %4858 = vmatpush1.bf16.msra.mxu0 %v6186_v35  ;;  %4472 = vmatprep.subr.bf16.mxu1 %v6187_v36  ;;  %v262_v35 = vcombine.low %v7372_v61, %v7375_v0  ;;  %v586_v36 = vcombine.low %v564_v1, %v578_v3  ;;  %v6271_v61 = vld [vmem:[#allocation5 + $0x130] ss:$8 sps:$4 sm:$0xff]   ;;  %v6282_v0 = vld [vmem:[#allocation5 + $0xa44] ss:$8 sps:$4 sm:$0xff]   ;;  %v6277_v1 = vld [vmem:[#allocation5 + $0x140] ss:$8 sps:$4 sm:$0xff]  }
  0x82   :  { %4859 = vmatprep.subr.bf16.mxu0 %v6189_v37  ;;  %v408_v37 = vcombine.low %v391_v18, %v405_v22  ;;  %v6285_v3 = vld [vmem:[#allocation5 + $0x154] ss:$8 sps:$4 sm:$0xff]   ;;  %v6304_v18 = vld [vmem:[#allocation5 + $0xa80] ss:$8 sps:$4 sm:$0xff]   ;;  %v6310_v22 = vld [vmem:[#allocation5 + $0xa90] ss:$8 sps:$4 sm:$0xff]  }
  0x84   :  { %4473 = vmatpush1.bf16.msra.mxu1 %v6191_v38  ;;  %v732_v38 = vcombine.low %v715_v23, %v729_v25  ;;  %v6315_v23 = vld [vmem:[#allocation5 + $0x1a4] ss:$8 sps:$4 sm:$0xff]   ;;  %v6352_v25 = vld [vmem:[#allocation2 + $0x28] ss:$72 sps:$4 sm:$0xff]  }
  0x85   :  { %4860 = vmatpush1.bf16.msra.mxu0 %v6192_v42  ;;  %4474 = vmatprep.subr.bf16.mxu1 %v6193_v43  ;;  %v265_v42 = vcombine.high %v7386_v28, %v7389_v30  ;;  %v589_v43 = vcombine.high %v7392_v31, %v7395_v32 }
  0x86   :  { %4861 = vmatprep.subr.bf16.mxu0 %v6195_v44  ;;  %v6241_v44 = vld [vmem:[#allocation5 + $0x100] ss:$8 sps:$4 sm:$0xff]   ;;  %v968_v47 = vpack.c.bf16 %v732_v38, %v408_v37  ;;  %v758_v38 = vrot.slane %v6358_v29, %v7369_v54 }
  0x87   :  { %v6316_v37 = vld [vmem:[#allocation5 + $0xaa0] ss:$8 sps:$4 sm:$0xff]  }
  0x88   :  { %4475 = vmatpush1.bf16.msra.mxu1 %v6197_v45  ;;  %v6256_v45 = vld [vmem:[#allocation5 + $0xa00] ss:$8 sps:$4 sm:$0xff]  }
  0x89   :  { %4862 = vmatpush1.bf16.msra.mxu0 %v6198_v46  ;;  %4476 = vmatprep.subr.bf16.mxu1 %v6199_v49  ;;  %v950_v46 = vpack.c.bf16 %v586_v36, %v262_v35  ;;  %v6261_v49 = vld [vmem:[#allocation5 + $0x114] ss:$8 sps:$4 sm:$0xff]   ;;  %v744_v35 = vrot.slane %v6356_v27, %v7369_v54  ;;  %v6313_v36 = vld [vmem:[#allocation5 + $0x1a0] ss:$8 sps:$4 sm:$0xff]   ;;  %v6390_v27 = vld [vmem:[#allocation5 + $0xb50] ss:$8 sps:$4 sm:$0xff]  }
  0x8a   :  { %4863 = vmatprep.subr.bf16.mxu0 %v6201_v50  ;;  %v6264_v50 = vld [vmem:[#allocation5 + $0xa14] ss:$8 sps:$4 sm:$0xff]   ;;  %v6457_v29 = vld [vmem:[#allocation2 + $0x128] ss:$72 sps:$4 sm:$0xff]  }
  0x8c   :  { %4477 = vmatpush1.bf16.msra.mxu1 %v6203_v51  ;;  %v953_v51 = vpack.c.bf16 %v589_v43, %v265_v42  ;;  %v767_v42 = vcombine.high %v744_v35, %v758_v38  ;;  %v6319_v43 = vld [vmem:[#allocation5 + $0x1b0] ss:$8 sps:$4 sm:$0xff]  }
  0x8d   :  { %4864 = vmatpush1.bf16.msra.mxu0 %v6204_v52  ;;  %4478 = vmatprep.subr.bf16.mxu1 %v6205_v53  ;;  %v6259_v52 = vld [vmem:[#allocation5 + $0x110] ss:$8 sps:$4 sm:$0xff]  }
  0x8e   :  { %4865 = vmatprep.subr.bf16.mxu0 %v6207_v55  ;;  %v6262_v53 = vld [vmem:[#allocation5 + $0xa10] ss:$8 sps:$4 sm:$0xff]   ;;  %v6267_v55 = vld [vmem:[#allocation5 + $0x124] ss:$8 sps:$4 sm:$0xff]  }
  0x90   :  { %4479 = vmatpush1.bf16.msra.mxu1 %v6209_v59  ;;  %v6273_v59 = vld [vmem:[#allocation5 + $0x134] ss:$8 sps:$4 sm:$0xff]  }
  0x91   :  { %4866 = vmatpush1.bf16.msra.mxu0 %v6210_v60  ;;  %4480 = vmatprep.subr.bf16.mxu1 %v6211_v63  ;;  %v6276_v60 = vld [vmem:[#allocation5 + $0xa34] ss:$8 sps:$4 sm:$0xff]   ;;  %v6279_v63 = vld [vmem:[#allocation5 + $0x144] ss:$8 sps:$4 sm:$0xff]  }
  0x92   :  { %4867 = vmatprep.subr.bf16.mxu0 %v6213_v2  ;;  %v6280_v2 = vld [vmem:[#allocation5 + $0xa40] ss:$8 sps:$4 sm:$0xff]  }
  0x94   :  { %4481 = vmatpush1.bf16.msra.mxu1 %v6215_v4  ;;  %v6288_v4 = vld [vmem:[#allocation5 + $0xa54] ss:$8 sps:$4 sm:$0xff]  }
  0x95   :  { %4868 = vmatpush1.bf16.msra.mxu0 %v6216_v5  ;;  %4482 = vmatprep.subr.bf16.mxu1 %v6217_v7  ;;  %v6283_v5 = vld [vmem:[#allocation5 + $0x150] ss:$8 sps:$4 sm:$0xff]   ;;  %v6291_v7 = vld [vmem:[#allocation5 + $0x164] ss:$8 sps:$4 sm:$0xff]  }
  0x96   :  { %4869 = vmatprep.subr.bf16.mxu0 %v6219_v8  ;;  %v6294_v8 = vld [vmem:[#allocation5 + $0xa64] ss:$8 sps:$4 sm:$0xff]  }
  0x98   :  { %4483 = vmatpush1.bf16.msra.mxu1 %v6221_v20  ;;  %v6312_v20 = vld [vmem:[#allocation5 + $0xa94] ss:$8 sps:$4 sm:$0xff]  }
  0x99   :  { %4870 = vmatpush1.bf16.msra.mxu0 %v6222_v21  ;;  %4484 = vmatprep.subr.bf16.mxu1 %v6223_v24  ;;  %v6307_v21 = vld [vmem:[#allocation5 + $0x190] ss:$8 sps:$4 sm:$0xff]   ;;  %v6318_v24 = vld [vmem:[#allocation5 + $0xaa4] ss:$8 sps:$4 sm:$0xff]  }
  0x9a   :  { %4871 = vmatprep.subr.bf16.mxu0 %v6225_v26  ;;  %v6354_v26 = vld [vmem:[#allocation2 + $0xb8] ss:$72 sps:$4 sm:$0xff]  }
  0x9c   :  { %4485 = vmatpush1.bf16.msra.mxu1 %v6227_v33  ;;  %v7404_v33 = vrot.slane %v6352_v25, %v7369_v54  ;;  %v6455_v25 = vld [vmem:[#allocation2 + $0x98] ss:$72 sps:$4 sm:$0xff]  }
  0x9d   :  { %4872 = vmatpush1.bf16.msra.mxu0 %v6228_v34  ;;  %4497 = vmatprep.subr.bf16.mxu1 %v6243_v39  ;;  %v7407_v34 = vrot.slane %v6354_v26, %v7369_v54  ;;  %v6321_v39 = vld [vmem:[#allocation5 + $0x1b4] ss:$8 sps:$4 sm:$0xff]   ;;  %v6387_v26 = vld [vmem:[#allocation5 + $0x250] ss:$8 sps:$4 sm:$0xff]  }
  0x9e   :  { %4884 = vmatprep.subr.bf16.mxu0 %v6258_v41  ;;  %v6324_v41 = vld [vmem:[#allocation5 + $0xab4] ss:$8 sps:$4 sm:$0xff]  }
  0x9f   :  { %4487 = vmatmul.mubr.bf16.vlgmr.msra.gmra.mrb[0].mxu1 %v950_v46  ;;  %v443_v40 = vcombine.high %v7404_v33, %v7407_v34  ;;  %v6327_v46 = vld [vmem:[#allocation5 + $0x1c4] ss:$8 sps:$4 sm:$0xff]  }
  0xa0   :  { %4874 = vmatmul.mubr.bf16.vlgmr.msra.gmra.mrb[0].mxu0 %v968_v47  ;;  %4498 = vmatpush1.bf16.msra.mxu1 %v6241_v44  ;;  %v6322_v44 = vld [vmem:[#allocation5 + $0xab0] ss:$8 sps:$4 sm:$0xff]   ;;  %v6330_v47 = vld [vmem:[#allocation5 + $0xac4] ss:$8 sps:$4 sm:$0xff]  }
  0xa1   :  { %4885 = vmatpush1.bf16.msra.mxu0 %v6256_v45  ;;  %4499 = vmatprep.subr.bf16.mxu1 %v6261_v49  ;;  %v971_v45 = vpack.c.bf16 %v767_v42, %v443_v40  ;;  %v6325_v49 = vld [vmem:[#allocation5 + $0x1c0] ss:$8 sps:$4 sm:$0xff]   ;;  %v6464_v40 = vld [vmem:[#allocation2 + $0x2c] ss:$72 sps:$4 sm:$0xff]  }
  0xa2   :  { %4886 = vmatprep.subr.bf16.mxu0 %v6264_v50  ;;  %4529 = vmatprep.mubr.bf16.mxu1 %v953_v51  ;;  %v6328_v50 = vld [vmem:[#allocation5 + $0xac0] ss:$8 sps:$4 sm:$0xff]   ;;  %v6333_v51 = vld [vmem:[#allocation5 + $0x1d4] ss:$8 sps:$4 sm:$0xff]  }
  0xa3   :  { %4916 = vmatprep.mubr.bf16.mxu0 %v971_v45  ;;  %v6466_v42 = vld [vmem:[#allocation2 + $0x14c] ss:$72 sps:$4 sm:$0xff]  }
  0xa4   :  { %4500 = vmatpush1.bf16.msra.mxu1 %v6259_v52  ;;  %v6336_v52 = vld [vmem:[#allocation5 + $0xad4] ss:$8 sps:$4 sm:$0xff]  }
  0xa5   :  { %4887 = vmatpush1.bf16.msra.mxu0 %v6262_v53  ;;  %4501 = vmatprep.subr.bf16.mxu1 %v6267_v55  ;;  %v6331_v53 = vld [vmem:[#allocation5 + $0x1d0] ss:$8 sps:$4 sm:$0xff]  }
  0xa6   :  { %4888 = vmatprep.subr.bf16.mxu0 %v6270_v56  ;;  %v6334_v55 = vld [vmem:[#allocation5 + $0xad0] ss:$8 sps:$4 sm:$0xff]   ;;  %v6339_v56 = vld [vmem:[#allocation5 + $0x1e4] ss:$8 sps:$4 sm:$0xff]  }
  0xa8   :  { %4502 = vmatpush1.bf16.msra.mxu1 %v6265_v57  ;;  %v6342_v57 = vld [vmem:[#allocation5 + $0xae4] ss:$8 sps:$4 sm:$0xff]  }
  0xa9   :  { %4889 = vmatpush1.bf16.msra.mxu0 %v6268_v58  ;;  %4503 = vmatprep.subr.bf16.mxu1 %v6273_v59  ;;  %v6337_v58 = vld [vmem:[#allocation5 + $0x1e0] ss:$8 sps:$4 sm:$0xff]  }
  0xaa   :  { %4890 = vmatprep.subr.bf16.mxu0 %v6276_v60  ;;  %v6340_v59 = vld [vmem:[#allocation5 + $0xae0] ss:$8 sps:$4 sm:$0xff]   ;;  %v6345_v60 = vld [vmem:[#allocation5 + $0x1f4] ss:$8 sps:$4 sm:$0xff]  }
  0xac   :  { %4504 = vmatpush1.bf16.msra.mxu1 %v6271_v61  ;;  %v6348_v61 = vld [vmem:[#allocation5 + $0xaf4] ss:$8 sps:$4 sm:$0xff]  }
  0xad   :  { %4891 = vmatpush1.bf16.msra.mxu0 %v6274_v62  ;;  %4505 = vmatprep.subr.bf16.mxu1 %v6279_v63  ;;  %v6343_v62 = vld [vmem:[#allocation5 + $0x1f0] ss:$8 sps:$4 sm:$0xff]  }
  0xae   :  { %4892 = vmatprep.subr.bf16.mxu0 %v6282_v0  ;;  %v6346_v63 = vld [vmem:[#allocation5 + $0xaf0] ss:$8 sps:$4 sm:$0xff]   ;;  %v264_v0 = vcombine.low %v7386_v28, %v7389_v30  ;;  %v6365_v28 = vld [vmem:[#allocation5 + $0x214] ss:$8 sps:$4 sm:$0xff]  }
  0xaf   :  { %v6368_v30 = vld [vmem:[#allocation5 + $0xb14] ss:$8 sps:$4 sm:$0xff]  }
  0xb0   :  { %4506 = vmatpush1.bf16.msra.mxu1 %v6277_v1  ;;  %v588_v1 = vcombine.low %v7392_v31, %v7395_v32  ;;  %v6363_v31 = vld [vmem:[#allocation5 + $0x210] ss:$8 sps:$4 sm:$0xff]  }
  0xb1   :  { %4893 = vmatpush1.bf16.msra.mxu0 %v6280_v2  ;;  %4507 = vmatprep.subr.bf16.mxu1 %v6285_v3  ;;  %v442_v2 = vcombine.low %v7404_v33, %v7407_v34  ;;  %v766_v3 = vcombine.low %v744_v35, %v758_v38  ;;  %v6366_v32 = vld [vmem:[#allocation5 + $0xb10] ss:$8 sps:$4 sm:$0xff]   ;;  %v6395_v34 = vld [vmem:[#allocation5 + $0x264] ss:$8 sps:$4 sm:$0xff]   ;;  %v7426_v38 = vrot.slane %v6457_v29, %v7369_v54 }
  0xb2   :  { %4894 = vmatprep.subr.bf16.mxu0 %v6288_v4  ;;  %v6351_v4 = vld [vmem:[#allocation5 + $0x204] ss:$8 sps:$4 sm:$0xff]   ;;  %v6459_v33 = vld [vmem:[#allocation2 + $0x1b8] ss:$72 sps:$4 sm:$0xff]  }
  0xb3   :  { %v6398_v35 = vld [vmem:[#allocation5 + $0xb64] ss:$8 sps:$4 sm:$0xff]  }
  0xb4   :  { %4508 = vmatpush1.bf16.msra.mxu1 %v6283_v5  ;;  %v6362_v5 = vld [vmem:[#allocation5 + $0xb04] ss:$8 sps:$4 sm:$0xff]  }
  0xb5   :  { %4895 = vmatpush1.bf16.msra.mxu0 %v6286_v6  ;;  %4509 = vmatprep.subr.bf16.mxu1 %v6291_v7  ;;  %v6349_v6 = vld [vmem:[#allocation5 + $0x200] ss:$8 sps:$4 sm:$0xff]  }
  0xb6   :  { %4896 = vmatprep.subr.bf16.mxu0 %v6294_v8  ;;  %v6360_v7 = vld [vmem:[#allocation5 + $0xb00] ss:$8 sps:$4 sm:$0xff]   ;;  %v952_v8 = vpack.c.bf16 %v588_v1, %v264_v0 }
  0xb7   :  { %v6405_v0 = vld [vmem:[#allocation5 + $0x280] ss:$8 sps:$4 sm:$0xff]  }
  0xb8   :  { %4510 = vmatpush1.bf16.msra.mxu1 %v6289_v9  ;;  %v970_v9 = vpack.c.bf16 %v766_v3, %v442_v2  ;;  %v6408_v1 = vld [vmem:[#allocation5 + $0xb80] ss:$8 sps:$4 sm:$0xff]   ;;  %v6413_v2 = vld [vmem:[#allocation5 + $0x294] ss:$8 sps:$4 sm:$0xff]  }
  0xb9   :  { %4897 = vmatpush1.bf16.msra.mxu0 %v6292_v10  ;;  %4511 = vmatprep.subr.bf16.mxu1 %v6297_v11  ;;  %v6371_v10 = vld [vmem:[#allocation5 + $0x224] ss:$8 sps:$4 sm:$0xff]   ;;  %v6416_v3 = vld [vmem:[#allocation5 + $0xb94] ss:$8 sps:$4 sm:$0xff]  }
  0xba   :  { %4898 = vmatprep.subr.bf16.mxu0 %v6300_v12  ;;  %v6374_v11 = vld [vmem:[#allocation5 + $0xb24] ss:$8 sps:$4 sm:$0xff]   ;;  %v6369_v12 = vld [vmem:[#allocation5 + $0x220] ss:$8 sps:$4 sm:$0xff]  }
  0xbc   :  { %4512 = vmatpush1.bf16.msra.mxu1 %v6295_v13  ;;  %v6372_v13 = vld [vmem:[#allocation5 + $0xb20] ss:$8 sps:$4 sm:$0xff]  }
  0xbd   :  { %4899 = vmatpush1.bf16.msra.mxu0 %v6298_v14  ;;  %4513 = vmatprep.subr.bf16.mxu1 %v6303_v15  ;;  %v6377_v14 = vld [vmem:[#allocation5 + $0x234] ss:$8 sps:$4 sm:$0xff]  }
  0xbe   :  { %4900 = vmatprep.subr.bf16.mxu0 %v6306_v16  ;;  %v6380_v15 = vld [vmem:[#allocation5 + $0xb34] ss:$8 sps:$4 sm:$0xff]   ;;  %v6375_v16 = vld [vmem:[#allocation5 + $0x230] ss:$8 sps:$4 sm:$0xff]  }
  0xc0   :  { %4514 = vmatpush1.bf16.msra.mxu1 %v6301_v17  ;;  %v6378_v17 = vld [vmem:[#allocation5 + $0xb30] ss:$8 sps:$4 sm:$0xff]  }
  0xc1   :  { %4901 = vmatpush1.bf16.msra.mxu0 %v6304_v18  ;;  %4515 = vmatprep.subr.bf16.mxu1 %v6309_v19  ;;  %v6383_v18 = vld [vmem:[#allocation5 + $0x244] ss:$8 sps:$4 sm:$0xff]  }
  0xc2   :  { %4902 = vmatprep.subr.bf16.mxu0 %v6312_v20  ;;  %v6386_v19 = vld [vmem:[#allocation5 + $0xb44] ss:$8 sps:$4 sm:$0xff]   ;;  %v6381_v20 = vld [vmem:[#allocation5 + $0x240] ss:$8 sps:$4 sm:$0xff]  }
  0xc4   :  { %4516 = vmatpush1.bf16.msra.mxu1 %v6307_v21  ;;  %v6384_v21 = vld [vmem:[#allocation5 + $0xb40] ss:$8 sps:$4 sm:$0xff]  }
  0xc5   :  { %4903 = vmatpush1.bf16.msra.mxu0 %v6310_v22  ;;  %4517 = vmatprep.subr.bf16.mxu1 %v6315_v23  ;;  %v6389_v22 = vld [vmem:[#allocation5 + $0x254] ss:$8 sps:$4 sm:$0xff]  }
  0xc6   :  { %4904 = vmatprep.subr.bf16.mxu0 %v6318_v24  ;;  %v6392_v23 = vld [vmem:[#allocation5 + $0xb54] ss:$8 sps:$4 sm:$0xff]   ;;  %v6453_v24 = vld [vmem:[#allocation2 + $0x8] ss:$72 sps:$4 sm:$0xff]  }
  0xc8   :  { %4518 = vmatpush1.bf16.msra.mxu1 %v6313_v36  ;;  %v7420_v36 = vrot.slane %v6453_v24, %v7369_v54  ;;  %v6447_v24 = vld [vmem:[#allocation5 + $0x2f0] ss:$8 sps:$4 sm:$0xff]  }
  0xc9   :  { %4905 = vmatpush1.bf16.msra.mxu0 %v6316_v37  ;;  %4519 = vmatprep.subr.bf16.mxu1 %v6321_v39  ;;  %v7423_v37 = vrot.slane %v6455_v25, %v7369_v54  ;;  %v7429_v39 = vrot.slane %v6459_v33, %v7369_v54  ;;  %v6450_v25 = vld [vmem:[#allocation5 + $0xbf0] ss:$8 sps:$4 sm:$0xff]  }
  0xca   :  { %4906 = vmatprep.subr.bf16.mxu0 %v6324_v41  ;;  %v6465_v41 = vld [vmem:[#allocation2 + $0xbc] ss:$72 sps:$4 sm:$0xff]  }
  0xcb   :  { %v623_v45 = vcombine.high %v7426_v38, %v7429_v39 }
  0xcc   :  { %4520 = vmatpush1.bf16.msra.mxu1 %v6319_v43  ;;  %v299_v43 = vcombine.high %v7420_v36, %v7423_v37 }
  0xcd   :  { %4907 = vmatpush1.bf16.msra.mxu0 %v6322_v44  ;;  %4521 = vmatprep.subr.bf16.mxu1 %v6327_v46  ;;  %v6467_v44 = vld [vmem:[#allocation2 + $0x1dc] ss:$72 sps:$4 sm:$0xff]   ;;  %v7436_v46 = vrot.slane %v6464_v40, %v7369_v54  ;;  %v6461_v40 = vld [vmem:[#allocation5 + $0x300] ss:$8 sps:$4 sm:$0xff]  }
  0xce   :  { %4908 = vmatprep.subr.bf16.mxu0 %v6330_v47  ;;  %v7439_v47 = vrot.slane %v6465_v41, %v7369_v54  ;;  %v6468_v41 = vld [vmem:[#allocation5 + $0xc00] ss:$8 sps:$4 sm:$0xff]  }
  0xd0   :  { %4522 = vmatpush1.bf16.msra.mxu1 %v6325_v49  ;;  %v7442_v49 = vrot.slane %v6466_v42, %v7369_v54  ;;  %v444_v29 = vcombine.low %v7436_v46, %v7439_v47  ;;  %v6561_v42 = vld [vmem:[#allocation2 + $0xc] ss:$72 sps:$4 sm:$0xff]  }
  0xd1   :  { %4909 = vmatpush1.bf16.msra.mxu0 %v6328_v50  ;;  %4523 = vmatprep.subr.bf16.mxu1 %v6333_v51  ;;  %v6393_v50 = vld [vmem:[#allocation5 + $0x260] ss:$8 sps:$4 sm:$0xff]  }
  0xd2   :  { %4910 = vmatprep.subr.bf16.mxu0 %v6336_v52  ;;  %v6396_v51 = vld [vmem:[#allocation5 + $0xb60] ss:$8 sps:$4 sm:$0xff]   ;;  %v7445_v52 = vrot.slane %v6467_v44, %v7369_v54  ;;  %v6563_v44 = vld [vmem:[#allocation2 + $0x12c] ss:$72 sps:$4 sm:$0xff]  }
  0xd4   :  { %4524 = vmatpush1.bf16.msra.mxu1 %v6331_v53  ;;  %v6401_v53 = vld [vmem:[#allocation5 + $0x274] ss:$8 sps:$4 sm:$0xff]   ;;  %v768_v33 = vcombine.low %v7442_v49, %v7445_v52 }
  0xd5   :  { %4911 = vmatpush1.bf16.msra.mxu0 %v6334_v55  ;;  %4525 = vmatprep.subr.bf16.mxu1 %v6339_v56  ;;  %v955_v55 = vpack.c.bf16 %v623_v45, %v299_v43  ;;  %v445_v56 = vcombine.high %v7436_v46, %v7439_v47  ;;  %v7460_v45 = vrot.slane %v6561_v42, %v7369_v54  ;;  %v6476_v46 = vld [vmem:[#allocation5 + $0xc14] ss:$8 sps:$4 sm:$0xff]   ;;  %v6525_v42 = vld [vmem:[#allocation5 + $0x3a0] ss:$8 sps:$4 sm:$0xff]  }
  0xd6   :  { %4912 = vmatprep.subr.bf16.mxu0 %v6342_v57  ;;  %v6404_v57 = vld [vmem:[#allocation5 + $0xb74] ss:$8 sps:$4 sm:$0xff]  }
  0xd8   :  { %4526 = vmatpush1.bf16.msra.mxu1 %v6337_v58  ;;  %v769_v58 = vcombine.high %v7442_v49, %v7445_v52  ;;  %v7466_v49 = vrot.slane %v6563_v44, %v7369_v54  ;;  %v6474_v52 = vld [vmem:[#allocation5 + $0xc10] ss:$8 sps:$4 sm:$0xff]  }
  0xd9   :  { %4913 = vmatpush1.bf16.msra.mxu0 %v6340_v59  ;;  %4527 = vmatprep.subr.bf16.mxu1 %v6345_v60  ;;  %v6399_v59 = vld [vmem:[#allocation5 + $0x270] ss:$8 sps:$4 sm:$0xff]  }
  0xda   :  { %4914 = vmatprep.subr.bf16.mxu0 %v6348_v61  ;;  %v6402_v60 = vld [vmem:[#allocation5 + $0xb70] ss:$8 sps:$4 sm:$0xff]   ;;  %v973_v61 = vpack.c.bf16 %v769_v58, %v445_v56 }
  0xdb   :  { %v6568_v58 = vld [vmem:[#allocation2 + $0x30] ss:$72 sps:$4 sm:$0xff]  }
  0xdc   :  { %4528 = vmatpush1.bf16.msra.mxu1 %v6343_v62  ;;  %v6407_v62 = vld [vmem:[#allocation5 + $0x284] ss:$8 sps:$4 sm:$0xff]   ;;  %v6531_v44 = vld [vmem:[#allocation5 + $0x3b0] ss:$8 sps:$4 sm:$0xff]  }
  0xdd   :  { %4915 = vmatpush1.bf16.msra.mxu0 %v6346_v63  ;;  %4540 = vmatprep.subr.bf16.mxu1 %v6351_v4  ;;  %v6410_v63 = vld [vmem:[#allocation5 + $0xb84] ss:$8 sps:$4 sm:$0xff]   ;;  %v6411_v4 = vld [vmem:[#allocation5 + $0x290] ss:$8 sps:$4 sm:$0xff]  }
  0xde   :  { %4927 = vmatprep.subr.bf16.mxu0 %v6362_v5  ;;  %v6414_v5 = vld [vmem:[#allocation5 + $0xb90] ss:$8 sps:$4 sm:$0xff]  }
  0xdf   :  { %4530 = vmatmul.mubr.bf16.vlgmr.msra.gmra.mrb[0].mxu1 %v952_v8  ;;  %v6417_v8 = vld [vmem:[#allocation5 + $0x2a0] ss:$8 sps:$4 sm:$0xff]  }
  0xe0   :  { %4917 = vmatmul.mubr.bf16.vlgmr.msra.gmra.mrb[0].mxu0 %v970_v9  ;;  %4541 = vmatpush1.bf16.msra.mxu1 %v6349_v6  ;;  %v6419_v6 = vld [vmem:[#allocation5 + $0x2a4] ss:$8 sps:$4 sm:$0xff]   ;;  %v6420_v9 = vld [vmem:[#allocation5 + $0xba0] ss:$8 sps:$4 sm:$0xff]  }
  0xe1   :  { %4928 = vmatpush1.bf16.msra.mxu0 %v6360_v7  ;;  %4542 = vmatprep.subr.bf16.mxu1 %v6365_v28  ;;  %v6422_v7 = vld [vmem:[#allocation5 + $0xba4] ss:$8 sps:$4 sm:$0xff]   ;;  %v6425_v28 = vld [vmem:[#allocation5 + $0x2b4] ss:$8 sps:$4 sm:$0xff]  }
  0xe2   :  { %4929 = vmatprep.subr.bf16.mxu0 %v6368_v30  ;;  %4572 = vmatprep.mubr.bf16.mxu1 %v955_v55  ;;  %v6428_v30 = vld [vmem:[#allocation5 + $0xbb4] ss:$8 sps:$4 sm:$0xff]   ;;  %v6482_v55 = vld [vmem:[#allocation5 + $0xc24] ss:$8 sps:$4 sm:$0xff]  }
  0xe3   :  { %4959 = vmatprep.mubr.bf16.mxu0 %v973_v61 }
  0xe4   :  { %4543 = vmatpush1.bf16.msra.mxu1 %v6363_v31  ;;  %v6423_v31 = vld [vmem:[#allocation5 + $0x2b0] ss:$8 sps:$4 sm:$0xff]  }
  0xe5   :  { %4930 = vmatpush1.bf16.msra.mxu0 %v6366_v32  ;;  %4544 = vmatprep.subr.bf16.mxu1 %v6371_v10  ;;  %v6426_v32 = vld [vmem:[#allocation5 + $0xbb0] ss:$8 sps:$4 sm:$0xff]   ;;  %v6431_v10 = vld [vmem:[#allocation5 + $0x2c4] ss:$8 sps:$4 sm:$0xff]  }
  0xe6   :  { %4931 = vmatprep.subr.bf16.mxu0 %v6374_v11  ;;  %v6434_v11 = vld [vmem:[#allocation5 + $0xbc4] ss:$8 sps:$4 sm:$0xff]  }
  0xe8   :  { %4545 = vmatpush1.bf16.msra.mxu1 %v6369_v12  ;;  %v6429_v12 = vld [vmem:[#allocation5 + $0x2c0] ss:$8 sps:$4 sm:$0xff]  }
  0xe9   :  { %4932 = vmatpush1.bf16.msra.mxu0 %v6372_v13  ;;  %4546 = vmatprep.subr.bf16.mxu1 %v6377_v14  ;;  %v6432_v13 = vld [vmem:[#allocation5 + $0xbc0] ss:$8 sps:$4 sm:$0xff]   ;;  %v6437_v14 = vld [vmem:[#allocation5 + $0x2d4] ss:$8 sps:$4 sm:$0xff]  }
  0xea   :  { %4933 = vmatprep.subr.bf16.mxu0 %v6380_v15  ;;  %v6440_v15 = vld [vmem:[#allocation5 + $0xbd4] ss:$8 sps:$4 sm:$0xff]  }
  0xec   :  { %4547 = vmatpush1.bf16.msra.mxu1 %v6375_v16  ;;  %v6435_v16 = vld [vmem:[#allocation5 + $0x2d0] ss:$8 sps:$4 sm:$0xff]  }
  0xed   :  { %4934 = vmatpush1.bf16.msra.mxu0 %v6378_v17  ;;  %4548 = vmatprep.subr.bf16.mxu1 %v6383_v18  ;;  %v6438_v17 = vld [vmem:[#allocation5 + $0xbd0] ss:$8 sps:$4 sm:$0xff]   ;;  %v6443_v18 = vld [vmem:[#allocation5 + $0x2e4] ss:$8 sps:$4 sm:$0xff]  }
  0xee   :  { %4935 = vmatprep.subr.bf16.mxu0 %v6386_v19  ;;  %v6446_v19 = vld [vmem:[#allocation5 + $0xbe4] ss:$8 sps:$4 sm:$0xff]  }
  0xf0   :  { %4549 = vmatpush1.bf16.msra.mxu1 %v6381_v20  ;;  %v6441_v20 = vld [vmem:[#allocation5 + $0x2e0] ss:$8 sps:$4 sm:$0xff]  }
  0xf1   :  { %4936 = vmatpush1.bf16.msra.mxu0 %v6384_v21  ;;  %4550 = vmatprep.subr.bf16.mxu1 %v6389_v22  ;;  %v6444_v21 = vld [vmem:[#allocation5 + $0xbe0] ss:$8 sps:$4 sm:$0xff]   ;;  %v6449_v22 = vld [vmem:[#allocation5 + $0x2f4] ss:$8 sps:$4 sm:$0xff]  }
  0xf2   :  { %4937 = vmatprep.subr.bf16.mxu0 %v6392_v23  ;;  %v6452_v23 = vld [vmem:[#allocation5 + $0xbf4] ss:$8 sps:$4 sm:$0xff]  }
  0xf4   :  { %4551 = vmatpush1.bf16.msra.mxu1 %v6387_v26  ;;  %v298_v26 = vcombine.low %v7420_v36, %v7423_v37  ;;  %v972_v36 = vpack.c.bf16 %v768_v33, %v444_v29  ;;  %v6562_v37 = vld [vmem:[#allocation2 + $0x9c] ss:$72 sps:$4 sm:$0xff]  }
  0xf5   :  { %4938 = vmatpush1.bf16.msra.mxu0 %v6390_v27  ;;  %4552 = vmatprep.subr.bf16.mxu1 %v6395_v34  ;;  %v622_v27 = vcombine.low %v7426_v38, %v7429_v39  ;;  %v6463_v34 = vld [vmem:[#allocation5 + $0x304] ss:$8 sps:$4 sm:$0xff]   ;;  %v6473_v39 = vld [vmem:[#allocation5 + $0x314] ss:$8 sps:$4 sm:$0xff]   ;;  %v7463_v47 = vrot.slane %v6562_v37, %v7369_v54 }
  0xf6   :  { %4939 = vmatprep.subr.bf16.mxu0 %v6398_v35  ;;  %v6470_v35 = vld [vmem:[#allocation5 + $0xc04] ss:$8 sps:$4 sm:$0xff]   ;;  %v6521_v29 = vld [vmem:[#allocation5 + $0x394] ss:$8 sps:$4 sm:$0xff]  }
  0xf7   :  { %v954_v43 = vpack.c.bf16 %v622_v27, %v298_v26  ;;  %v6564_v38 = vld [vmem:[#allocation2 + $0x1bc] ss:$72 sps:$4 sm:$0xff]   ;;  %v301_v56 = vcombine.high %v7460_v45, %v7463_v47  ;;  %v6513_v26 = vld [vmem:[#allocation5 + $0x380] ss:$8 sps:$4 sm:$0xff]  }
  0xf8   :  { %4553 = vmatpush1.bf16.msra.mxu1 %v6393_v50  ;;  %v7469_v50 = vrot.slane %v6564_v38, %v7369_v54  ;;  %v6516_v27 = vld [vmem:[#allocation5 + $0xc80] ss:$8 sps:$4 sm:$0xff]   ;;  %v6524_v33 = vld [vmem:[#allocation5 + $0xc94] ss:$8 sps:$4 sm:$0xff]   ;;  %v6534_v38 = vld [vmem:[#allocation5 + $0xcb0] ss:$8 sps:$4 sm:$0xff]  }
  0xf9   :  { %4940 = vmatpush1.bf16.msra.mxu0 %v6396_v51  ;;  %4554 = vmatprep.subr.bf16.mxu1 %v6401_v53  ;;  %v6471_v51 = vld [vmem:[#allocation5 + $0x310] ss:$8 sps:$4 sm:$0xff]   ;;  %v6479_v53 = vld [vmem:[#allocation5 + $0x324] ss:$8 sps:$4 sm:$0xff]   ;;  %v6536_v37 = vld [vmem:[#allocation5 + $0xcb4] ss:$8 sps:$4 sm:$0xff]  }
  0xfa   :  { %4941 = vmatprep.subr.bf16.mxu0 %v6404_v57  ;;  %v625_v57 = vcombine.high %v7466_v49, %v7469_v50 }
  0xfc   :  { %4555 = vmatpush1.bf16.msra.mxu1 %v6399_v59  ;;  %v6570_v59 = vld [vmem:[#allocation2 + $0xc0] ss:$72 sps:$4 sm:$0xff]   ;;  %v957_v61 = vpack.c.bf16 %v625_v57, %v301_v56  ;;  %v6543_v56 = vld [vmem:[#allocation5 + $0x3d0] ss:$8 sps:$4 sm:$0xff]  }
  0xfd   :  { %4942 = vmatpush1.bf16.msra.mxu0 %v6402_v60  ;;  %4556 = vmatprep.subr.bf16.mxu1 %v6407_v62  ;;  %v6572_v60 = vld [vmem:[#allocation2 + $0x150] ss:$72 sps:$4 sm:$0xff]   ;;  %v6574_v62 = vld [vmem:[#allocation2 + $0x1e0] ss:$72 sps:$4 sm:$0xff]  }
  0xfe   :  { %4943 = vmatprep.subr.bf16.mxu0 %v6410_v63  ;;  %v7476_v63 = vrot.slane %v6568_v58, %v7369_v54  ;;  %v6546_v57 = vld [vmem:[#allocation5 + $0xcd0] ss:$8 sps:$4 sm:$0xff]   ;;  %v6551_v58 = vld [vmem:[#allocation5 + $0x3e4] ss:$8 sps:$4 sm:$0xff]  }
 0x100   :  { %4557 = vmatpush1.bf16.msra.mxu1 %v6405_v0  ;;  %v7479_v0 = vrot.slane %v6570_v59, %v7369_v54  ;;  %v6554_v59 = vld [vmem:[#allocation5 + $0xce4] ss:$8 sps:$4 sm:$0xff]  }
 0x101   :  { %4944 = vmatpush1.bf16.msra.mxu0 %v6408_v1  ;;  %4558 = vmatprep.subr.bf16.mxu1 %v6413_v2  ;;  %v7482_v1 = vrot.slane %v6572_v60, %v7369_v54  ;;  %v6477_v2 = vld [vmem:[#allocation5 + $0x320] ss:$8 sps:$4 sm:$0xff]   ;;  %v6669_v60 = vld [vmem:[#allocation2 + $0x10] ss:$72 sps:$4 sm:$0xff]  }
 0x102   :  { %4945 = vmatprep.subr.bf16.mxu0 %v6416_v3  ;;  %v6480_v3 = vld [vmem:[#allocation5 + $0xc20] ss:$8 sps:$4 sm:$0xff]  }
 0x104   :  { %4559 = vmatpush1.bf16.msra.mxu1 %v6411_v4  ;;  %v7485_v4 = vrot.slane %v6574_v62, %v7369_v54  ;;  %v6673_v62 = vld [vmem:[#allocation2 + $0x130] ss:$72 sps:$4 sm:$0xff]  }
 0x105   :  { %4946 = vmatpush1.bf16.msra.mxu0 %v6414_v5  ;;  %4560 = vmatprep.subr.bf16.mxu1 %v6419_v6  ;;  %v6485_v5 = vld [vmem:[#allocation5 + $0x334] ss:$8 sps:$4 sm:$0xff]   ;;  %v479_v6 = vcombine.high %v7476_v63, %v7479_v0 }
 0x106   :  { %4947 = vmatprep.subr.bf16.mxu0 %v6422_v7  ;;  %v6488_v7 = vld [vmem:[#allocation5 + $0xc34] ss:$8 sps:$4 sm:$0xff]  }
 0x108   :  { %4561 = vmatpush1.bf16.msra.mxu1 %v6417_v8  ;;  %v803_v8 = vcombine.high %v7482_v1, %v7485_v4 }
 0x109   :  { %4948 = vmatpush1.bf16.msra.mxu0 %v6420_v9  ;;  %4562 = vmatprep.subr.bf16.mxu1 %v6425_v28  ;;  %v6483_v9 = vld [vmem:[#allocation5 + $0x330] ss:$8 sps:$4 sm:$0xff]  }
 0x10a   :  { %4949 = vmatprep.subr.bf16.mxu0 %v6428_v30  ;;  %v6486_v28 = vld [vmem:[#allocation5 + $0xc30] ss:$8 sps:$4 sm:$0xff]   ;;  %v975_v30 = vpack.c.bf16 %v803_v8, %v479_v6  ;;  %v6682_v6 = vld [vmem:[#allocation2 + $0x154] ss:$72 sps:$4 sm:$0xff]   ;;  %v6549_v8 = vld [vmem:[#allocation5 + $0x3e0] ss:$8 sps:$4 sm:$0xff]  }
 0x10c   :  { %4563 = vmatpush1.bf16.msra.mxu1 %v6423_v31  ;;  %v6491_v31 = vld [vmem:[#allocation5 + $0x344] ss:$8 sps:$4 sm:$0xff]  }
 0x10d   :  { %4950 = vmatpush1.bf16.msra.mxu0 %v6426_v32  ;;  %4564 = vmatprep.subr.bf16.mxu1 %v6431_v10  ;;  %v6494_v32 = vld [vmem:[#allocation5 + $0xc44] ss:$8 sps:$4 sm:$0xff]   ;;  %v6489_v10 = vld [vmem:[#allocation5 + $0x340] ss:$8 sps:$4 sm:$0xff]  }
 0x10e   :  { %4951 = vmatprep.subr.bf16.mxu0 %v6434_v11  ;;  %v6492_v11 = vld [vmem:[#allocation5 + $0xc40] ss:$8 sps:$4 sm:$0xff]  }
 0x110   :  { %4565 = vmatpush1.bf16.msra.mxu1 %v6429_v12  ;;  %v6497_v12 = vld [vmem:[#allocation5 + $0x354] ss:$8 sps:$4 sm:$0xff]  }
 0x111   :  { %4952 = vmatpush1.bf16.msra.mxu0 %v6432_v13  ;;  %4566 = vmatprep.subr.bf16.mxu1 %v6437_v14  ;;  %v6500_v13 = vld [vmem:[#allocation5 + $0xc54] ss:$8 sps:$4 sm:$0xff]   ;;  %v6495_v14 = vld [vmem:[#allocation5 + $0x350] ss:$8 sps:$4 sm:$0xff]  }
 0x112   :  { %4953 = vmatprep.subr.bf16.mxu0 %v6440_v15  ;;  %v6498_v15 = vld [vmem:[#allocation5 + $0xc50] ss:$8 sps:$4 sm:$0xff]  }
 0x114   :  { %4567 = vmatpush1.bf16.msra.mxu1 %v6435_v16  ;;  %v6503_v16 = vld [vmem:[#allocation5 + $0x364] ss:$8 sps:$4 sm:$0xff]  }
 0x115   :  { %4954 = vmatpush1.bf16.msra.mxu0 %v6438_v17  ;;  %4568 = vmatprep.subr.bf16.mxu1 %v6443_v18  ;;  %v6506_v17 = vld [vmem:[#allocation5 + $0xc64] ss:$8 sps:$4 sm:$0xff]   ;;  %v6501_v18 = vld [vmem:[#allocation5 + $0x360] ss:$8 sps:$4 sm:$0xff]  }
 0x116   :  { %4955 = vmatprep.subr.bf16.mxu0 %v6446_v19  ;;  %v6504_v19 = vld [vmem:[#allocation5 + $0xc60] ss:$8 sps:$4 sm:$0xff]  }
 0x118   :  { %4569 = vmatpush1.bf16.msra.mxu1 %v6441_v20  ;;  %v6509_v20 = vld [vmem:[#allocation5 + $0x374] ss:$8 sps:$4 sm:$0xff]  }
 0x119   :  { %4956 = vmatpush1.bf16.msra.mxu0 %v6444_v21  ;;  %4570 = vmatprep.subr.bf16.mxu1 %v6449_v22  ;;  %v6512_v21 = vld [vmem:[#allocation5 + $0xc74] ss:$8 sps:$4 sm:$0xff]   ;;  %v6507_v22 = vld [vmem:[#allocation5 + $0x370] ss:$8 sps:$4 sm:$0xff]  }
 0x11a   :  { %4957 = vmatprep.subr.bf16.mxu0 %v6452_v23  ;;  %v6510_v23 = vld [vmem:[#allocation5 + $0xc70] ss:$8 sps:$4 sm:$0xff]  }
 0x11c   :  { %4571 = vmatpush1.bf16.msra.mxu1 %v6447_v24  ;;  %v6515_v24 = vld [vmem:[#allocation5 + $0x384] ss:$8 sps:$4 sm:$0xff]  }
 0x11d   :  { %4958 = vmatpush1.bf16.msra.mxu0 %v6450_v25  ;;  %4583 = vmatprep.subr.bf16.mxu1 %v6463_v34  ;;  %v6518_v25 = vld [vmem:[#allocation5 + $0xc84] ss:$8 sps:$4 sm:$0xff]   ;;  %v6519_v34 = vld [vmem:[#allocation5 + $0x390] ss:$8 sps:$4 sm:$0xff]  }
 0x11e   :  { %4970 = vmatprep.subr.bf16.mxu0 %v6470_v35  ;;  %v6522_v35 = vld [vmem:[#allocation5 + $0xc90] ss:$8 sps:$4 sm:$0xff]  }
 0x11f   :  { %4573 = vmatmul.mubr.bf16.vlgmr.msra.gmra.mrb[0].mxu1 %v954_v43  ;;  %v6528_v43 = vld [vmem:[#allocation5 + $0xca0] ss:$8 sps:$4 sm:$0xff]  }
 0x120   :  { %4960 = vmatmul.mubr.bf16.vlgmr.msra.gmra.mrb[0].mxu0 %v972_v36  ;;  %4584 = vmatpush1.bf16.msra.mxu1 %v6461_v40  ;;  %v6527_v40 = vld [vmem:[#allocation5 + $0x3a4] ss:$8 sps:$4 sm:$0xff]   ;;  %v6533_v36 = vld [vmem:[#allocation5 + $0x3b4] ss:$8 sps:$4 sm:$0xff]  }
 0x121   :  { %4971 = vmatpush1.bf16.msra.mxu0 %v6468_v41  ;;  %4585 = vmatprep.subr.bf16.mxu1 %v6473_v39  ;;  %v6530_v41 = vld [vmem:[#allocation5 + $0xca4] ss:$8 sps:$4 sm:$0xff]  }
 0x122   :  { %4972 = vmatprep.subr.bf16.mxu0 %v6476_v46  ;;  %4615 = vmatprep.mubr.bf16.mxu1 %v957_v61  ;;  %v6539_v39 = vld [vmem:[#allocation5 + $0x3c4] ss:$8 sps:$4 sm:$0xff]   ;;  %v6671_v61 = vld [vmem:[#allocation2 + $0xa0] ss:$72 sps:$4 sm:$0xff]  }
 0x123   :  { %5002 = vmatprep.mubr.bf16.mxu0 %v975_v30  ;;  %v6542_v46 = vld [vmem:[#allocation5 + $0xcc4] ss:$8 sps:$4 sm:$0xff]   ;;  %v7492_v30 = vrot.slane %v6669_v60, %v7369_v54  ;;  %v6617_v60 = vld [vmem:[#allocation5 + $0x474] ss:$8 sps:$4 sm:$0xff]  }
 0x124   :  { %4586 = vmatpush1.bf16.msra.mxu1 %v6471_v51  ;;  %v6537_v51 = vld [vmem:[#allocation5 + $0x3c0] ss:$8 sps:$4 sm:$0xff]  }
 0x125   :  { %4973 = vmatpush1.bf16.msra.mxu0 %v6474_v52  ;;  %4587 = vmatprep.subr.bf16.mxu1 %v6479_v53  ;;  %v6540_v52 = vld [vmem:[#allocation5 + $0xcc0] ss:$8 sps:$4 sm:$0xff]   ;;  %v6545_v53 = vld [vmem:[#allocation5 + $0x3d4] ss:$8 sps:$4 sm:$0xff]  }
 0x126   :  { %4974 = vmatprep.subr.bf16.mxu0 %v6482_v55  ;;  %v6548_v55 = vld [vmem:[#allocation5 + $0xcd4] ss:$8 sps:$4 sm:$0xff]  }
 0x128   :  { %4588 = vmatpush1.bf16.msra.mxu1 %v6477_v2  ;;  %v6675_v2 = vld [vmem:[#allocation2 + $0x1c0] ss:$72 sps:$4 sm:$0xff]  }
 0x129   :  { %4975 = vmatpush1.bf16.msra.mxu0 %v6480_v3  ;;  %4589 = vmatprep.subr.bf16.mxu1 %v6485_v5  ;;  %v6680_v3 = vld [vmem:[#allocation2 + $0x34] ss:$72 sps:$4 sm:$0xff]   ;;  %v6681_v5 = vld [vmem:[#allocation2 + $0xc4] ss:$72 sps:$4 sm:$0xff]  }
 0x12a   :  { %4976 = vmatprep.subr.bf16.mxu0 %v6488_v7  ;;  %v6683_v7 = vld [vmem:[#allocation2 + $0x1e4] ss:$72 sps:$4 sm:$0xff]  }
 0x12c   :  { %4590 = vmatpush1.bf16.msra.mxu1 %v6483_v9  ;;  %v6552_v9 = vld [vmem:[#allocation5 + $0xce0] ss:$8 sps:$4 sm:$0xff]  }
 0x12d   :  { %4977 = vmatpush1.bf16.msra.mxu0 %v6486_v28  ;;  %4591 = vmatprep.subr.bf16.mxu1 %v6491_v31  ;;  %v6557_v28 = vld [vmem:[#allocation5 + $0x3f4] ss:$8 sps:$4 sm:$0xff]  }
 0x12e   :  { %4978 = vmatprep.subr.bf16.mxu0 %v6494_v32  ;;  %v6560_v31 = vld [vmem:[#allocation5 + $0xcf4] ss:$8 sps:$4 sm:$0xff]   ;;  %v7495_v32 = vrot.slane %v6671_v61, %v7369_v54 }
 0x12f   :  { %v6620_v61 = vld [vmem:[#allocation5 + $0xd74] ss:$8 sps:$4 sm:$0xff]  }
 0x130   :  { %4592 = vmatpush1.bf16.msra.mxu1 %v6489_v10  ;;  %v7498_v10 = vrot.slane %v6673_v62, %v7369_v54  ;;  %v6615_v62 = vld [vmem:[#allocation5 + $0x470] ss:$8 sps:$4 sm:$0xff]  }
 0x131   :  { %4979 = vmatpush1.bf16.msra.mxu0 %v6492_v11  ;;  %4593 = vmatprep.subr.bf16.mxu1 %v6497_v12  ;;  %v7501_v11 = vrot.slane %v6675_v2, %v7369_v54  ;;  %v7504_v12 = vrot.slane %v6680_v3, %v7369_v54  ;;  %v6618_v2 = vld [vmem:[#allocation5 + $0xd70] ss:$8 sps:$4 sm:$0xff]   ;;  %v6623_v3 = vld [vmem:[#allocation5 + $0x484] ss:$8 sps:$4 sm:$0xff]  }
 0x132   :  { %4980 = vmatprep.subr.bf16.mxu0 %v6500_v13  ;;  %v7507_v13 = vrot.slane %v6681_v5, %v7369_v54  ;;  %v6626_v5 = vld [vmem:[#allocation5 + $0xd84] ss:$8 sps:$4 sm:$0xff]  }
 0x134   :  { %4594 = vmatpush1.bf16.msra.mxu1 %v6495_v14  ;;  %v7510_v14 = vrot.slane %v6682_v6, %v7369_v54  ;;  %v6621_v6 = vld [vmem:[#allocation5 + $0x480] ss:$8 sps:$4 sm:$0xff]  }
 0x135   :  { %4981 = vmatpush1.bf16.msra.mxu0 %v6498_v15  ;;  %4595 = vmatprep.subr.bf16.mxu1 %v6503_v16  ;;  %v7513_v15 = vrot.slane %v6683_v7, %v7369_v54  ;;  %v6555_v16 = vld [vmem:[#allocation5 + $0x3f0] ss:$8 sps:$4 sm:$0xff]   ;;  %v6624_v7 = vld [vmem:[#allocation5 + $0xd80] ss:$8 sps:$4 sm:$0xff]  }
 0x136   :  { %4982 = vmatprep.subr.bf16.mxu0 %v6506_v17  ;;  %v6558_v17 = vld [vmem:[#allocation5 + $0xcf0] ss:$8 sps:$4 sm:$0xff]  }
 0x138   :  { %4596 = vmatpush1.bf16.msra.mxu1 %v6501_v18  ;;  %v300_v18 = vcombine.low %v7460_v45, %v7463_v47  ;;  %v659_v45 = vcombine.high %v7498_v10, %v7501_v11  ;;  %v481_v47 = vcombine.high %v7504_v12, %v7507_v13 }
 0x139   :  { %4983 = vmatpush1.bf16.msra.mxu0 %v6504_v19  ;;  %4597 = vmatprep.subr.bf16.mxu1 %v6509_v20  ;;  %v624_v19 = vcombine.low %v7466_v49, %v7469_v50  ;;  %v478_v20 = vcombine.low %v7476_v63, %v7479_v0  ;;  %v805_v49 = vcombine.high %v7510_v14, %v7513_v15  ;;  %v6565_v50 = vld [vmem:[#allocation5 + $0x400] ss:$8 sps:$4 sm:$0xff]  }
 0x13a   :  { %4984 = vmatprep.subr.bf16.mxu0 %v6512_v21  ;;  %v802_v21 = vcombine.low %v7482_v1, %v7485_v4  ;;  %v6576_v63 = vld [vmem:[#allocation5 + $0xd00] ss:$8 sps:$4 sm:$0xff]   ;;  %v6581_v4 = vld [vmem:[#allocation5 + $0x414] ss:$8 sps:$4 sm:$0xff]  }
 0x13b   :  { %v956_v0 = vpack.c.bf16 %v624_v19, %v300_v18  ;;  %v6633_v18 = vld [vmem:[#allocation5 + $0x4a0] ss:$8 sps:$4 sm:$0xff]  }
 0x13c   :  { %4598 = vmatpush1.bf16.msra.mxu1 %v6507_v22  ;;  %v6567_v22 = vld [vmem:[#allocation5 + $0x404] ss:$8 sps:$4 sm:$0xff]   ;;  %v974_v1 = vpack.c.bf16 %v802_v21, %v478_v20  ;;  %v6636_v19 = vld [vmem:[#allocation5 + $0xda0] ss:$8 sps:$4 sm:$0xff]   ;;  %v6641_v20 = vld [vmem:[#allocation5 + $0x4b4] ss:$8 sps:$4 sm:$0xff]  }
 0x13d   :  { %4985 = vmatpush1.bf16.msra.mxu0 %v6510_v23  ;;  %4599 = vmatprep.subr.bf16.mxu1 %v6515_v24  ;;  %v6578_v23 = vld [vmem:[#allocation5 + $0xd04] ss:$8 sps:$4 sm:$0xff]   ;;  %v335_v24 = vcombine.high %v7492_v30, %v7495_v32  ;;  %v6644_v21 = vld [vmem:[#allocation5 + $0xdb4] ss:$8 sps:$4 sm:$0xff]  }
 0x13e   :  { %4986 = vmatprep.subr.bf16.mxu0 %v6518_v25  ;;  %v6584_v25 = vld [vmem:[#allocation5 + $0xd14] ss:$8 sps:$4 sm:$0xff]  }
 0x140   :  { %4600 = vmatpush1.bf16.msra.mxu1 %v6513_v26  ;;  %v959_v26 = vpack.c.bf16 %v659_v45, %v335_v24  ;;  %v6647_v24 = vld [vmem:[#allocation5 + $0x4c4] ss:$8 sps:$4 sm:$0xff]  }
 0x141   :  { %4987 = vmatpush1.bf16.msra.mxu0 %v6516_v27  ;;  %4601 = vmatprep.subr.bf16.mxu1 %v6521_v29  ;;  %v977_v27 = vpack.c.bf16 %v805_v49, %v481_v47  ;;  %v6579_v29 = vld [vmem:[#allocation5 + $0x410] ss:$8 sps:$4 sm:$0xff]   ;;  %v6650_v45 = vld [vmem:[#allocation5 + $0xdc4] ss:$8 sps:$4 sm:$0xff]   ;;  %v6645_v47 = vld [vmem:[#allocation5 + $0x4c0] ss:$8 sps:$4 sm:$0xff]  }
 0x142   :  { %4988 = vmatprep.subr.bf16.mxu0 %v6524_v33  ;;  %v6582_v33 = vld [vmem:[#allocation5 + $0xd10] ss:$8 sps:$4 sm:$0xff]   ;;  %v6648_v49 = vld [vmem:[#allocation5 + $0xdc0] ss:$8 sps:$4 sm:$0xff]  }
 0x144   :  { %4602 = vmatpush1.bf16.msra.mxu1 %v6519_v34  ;;  %v6587_v34 = vld [vmem:[#allocation5 + $0x424] ss:$8 sps:$4 sm:$0xff]  }
 0x145   :  { %4989 = vmatpush1.bf16.msra.mxu0 %v6522_v35  ;;  %4603 = vmatprep.subr.bf16.mxu1 %v6527_v40  ;;  %v6590_v35 = vld [vmem:[#allocation5 + $0xd24] ss:$8 sps:$4 sm:$0xff]   ;;  %v6585_v40 = vld [vmem:[#allocation5 + $0x420] ss:$8 sps:$4 sm:$0xff]  }
 0x146   :  { %4990 = vmatprep.subr.bf16.mxu0 %v6530_v41  ;;  %v6588_v41 = vld [vmem:[#allocation5 + $0xd20] ss:$8 sps:$4 sm:$0xff]  }
 0x148   :  { %4604 = vmatpush1.bf16.msra.mxu1 %v6525_v42  ;;  %v6593_v42 = vld [vmem:[#allocation5 + $0x434] ss:$8 sps:$4 sm:$0xff]  }
 0x149   :  { %4991 = vmatpush1.bf16.msra.mxu0 %v6528_v43  ;;  %4605 = vmatprep.subr.bf16.mxu1 %v6533_v36  ;;  %v6596_v43 = vld [vmem:[#allocation5 + $0xd34] ss:$8 sps:$4 sm:$0xff]   ;;  %v6591_v36 = vld [vmem:[#allocation5 + $0x430] ss:$8 sps:$4 sm:$0xff]  }
 0x14a   :  { %4992 = vmatprep.subr.bf16.mxu0 %v6536_v37  ;;  %v6594_v37 = vld [vmem:[#allocation5 + $0xd30] ss:$8 sps:$4 sm:$0xff]  }
 0x14c   :  { %4606 = vmatpush1.bf16.msra.mxu1 %v6531_v44  ;;  %v6599_v44 = vld [vmem:[#allocation5 + $0x444] ss:$8 sps:$4 sm:$0xff]  }
 0x14d   :  { %4993 = vmatpush1.bf16.msra.mxu0 %v6534_v38  ;;  %4607 = vmatprep.subr.bf16.mxu1 %v6539_v39  ;;  %v6602_v38 = vld [vmem:[#allocation5 + $0xd44] ss:$8 sps:$4 sm:$0xff]   ;;  %v6597_v39 = vld [vmem:[#allocation5 + $0x440] ss:$8 sps:$4 sm:$0xff]  }
 0x14e   :  { %4994 = vmatprep.subr.bf16.mxu0 %v6542_v46  ;;  %v6600_v46 = vld [vmem:[#allocation5 + $0xd40] ss:$8 sps:$4 sm:$0xff]  }
 0x150   :  { %4608 = vmatpush1.bf16.msra.mxu1 %v6537_v51  ;;  %v6605_v51 = vld [vmem:[#allocation5 + $0x454] ss:$8 sps:$4 sm:$0xff]  }
 0x151   :  { %4995 = vmatpush1.bf16.msra.mxu0 %v6540_v52  ;;  %4609 = vmatprep.subr.bf16.mxu1 %v6545_v53  ;;  %v6608_v52 = vld [vmem:[#allocation5 + $0xd54] ss:$8 sps:$4 sm:$0xff]   ;;  %v6603_v53 = vld [vmem:[#allocation5 + $0x450] ss:$8 sps:$4 sm:$0xff]  }
 0x152   :  { %4996 = vmatprep.subr.bf16.mxu0 %v6548_v55  ;;  %v6606_v55 = vld [vmem:[#allocation5 + $0xd50] ss:$8 sps:$4 sm:$0xff]  }
 0x154   :  { %4610 = vmatpush1.bf16.msra.mxu1 %v6543_v56  ;;  %v6611_v56 = vld [vmem:[#allocation5 + $0x464] ss:$8 sps:$4 sm:$0xff]  }
 0x155   :  { %4997 = vmatpush1.bf16.msra.mxu0 %v6546_v57  ;;  %4611 = vmatprep.subr.bf16.mxu1 %v6551_v58  ;;  %v6614_v57 = vld [vmem:[#allocation5 + $0xd64] ss:$8 sps:$4 sm:$0xff]   ;;  %v6609_v58 = vld [vmem:[#allocation5 + $0x460] ss:$8 sps:$4 sm:$0xff]  }
 0x156   :  { %4998 = vmatprep.subr.bf16.mxu0 %v6554_v59  ;;  %v6612_v59 = vld [vmem:[#allocation5 + $0xd60] ss:$8 sps:$4 sm:$0xff]  }
 0x158   :  { %4612 = vmatpush1.bf16.msra.mxu1 %v6549_v8  ;;  %v6629_v8 = vld [vmem:[#allocation5 + $0x494] ss:$8 sps:$4 sm:$0xff]  }
 0x159   :  { %4999 = vmatpush1.bf16.msra.mxu0 %v6552_v9  ;;  %4613 = vmatprep.subr.bf16.mxu1 %v6557_v28  ;;  %v6632_v9 = vld [vmem:[#allocation5 + $0xd94] ss:$8 sps:$4 sm:$0xff]   ;;  %v6627_v28 = vld [vmem:[#allocation5 + $0x490] ss:$8 sps:$4 sm:$0xff]  }
 0x15a   :  { %5000 = vmatprep.subr.bf16.mxu0 %v6560_v31  ;;  %v6630_v31 = vld [vmem:[#allocation5 + $0xd90] ss:$8 sps:$4 sm:$0xff]  }
 0x15c   :  { %4614 = vmatpush1.bf16.msra.mxu1 %v6555_v16  ;;  %v6635_v16 = vld [vmem:[#allocation5 + $0x4a4] ss:$8 sps:$4 sm:$0xff]  }
 0x15d   :  { %5001 = vmatpush1.bf16.msra.mxu0 %v6558_v17  ;;  %4626 = vmatprep.subr.bf16.mxu1 %v6567_v22  ;;  %v6638_v17 = vld [vmem:[#allocation5 + $0xda4] ss:$8 sps:$4 sm:$0xff]   ;;  %v6639_v22 = vld [vmem:[#allocation5 + $0x4b0] ss:$8 sps:$4 sm:$0xff]  }
 0x15e   :  { %5013 = vmatprep.subr.bf16.mxu0 %v6578_v23  ;;  %v6642_v23 = vld [vmem:[#allocation5 + $0xdb0] ss:$8 sps:$4 sm:$0xff]  }
 0x15f   :  { %4616 = vmatmul.mubr.bf16.vlgmr.msra.gmra.mrb[0].mxu1 %v956_v0  ;;  %v6651_v0 = vld [vmem:[#allocation5 + $0x4d0] ss:$8 sps:$4 sm:$0xff]  }
 0x160   :  { %5003 = vmatmul.mubr.bf16.vlgmr.msra.gmra.mrb[0].mxu0 %v974_v1  ;;  %4627 = vmatpush1.bf16.msra.mxu1 %v6565_v50  ;;  %v6653_v50 = vld [vmem:[#allocation5 + $0x4d4] ss:$8 sps:$4 sm:$0xff]   ;;  %v6654_v1 = vld [vmem:[#allocation5 + $0xdd0] ss:$8 sps:$4 sm:$0xff]  }
 0x161   :  { %5014 = vmatpush1.bf16.msra.mxu0 %v6576_v63  ;;  %4628 = vmatprep.subr.bf16.mxu1 %v6581_v4  ;;  %v6656_v63 = vld [vmem:[#allocation5 + $0xdd4] ss:$8 sps:$4 sm:$0xff]  }
 0x162   :  { %5015 = vmatprep.subr.bf16.mxu0 %v6584_v25  ;;  %4658 = vmatprep.mubr.bf16.mxu1 %v959_v26  ;;  %v6777_v4 = vld [vmem:[#allocation2 + $0x14] ss:$72 sps:$4 sm:$0xff]   ;;  %v6659_v25 = vld [vmem:[#allocation5 + $0x4e4] ss:$8 sps:$4 sm:$0xff]  }
 0x163   :  { %5045 = vmatprep.mubr.bf16.mxu0 %v977_v27  ;;  %v6662_v26 = vld [vmem:[#allocation5 + $0xde4] ss:$8 sps:$4 sm:$0xff]  }
 0x164   :  { %4629 = vmatpush1.bf16.msra.mxu1 %v6579_v29  ;;  %v6778_v27 = vld [vmem:[#allocation2 + $0xa4] ss:$72 sps:$4 sm:$0xff]   ;;  %v6779_v29 = vld [vmem:[#allocation2 + $0x134] ss:$72 sps:$4 sm:$0xff]  }
 0x165   :  { %5016 = vmatpush1.bf16.msra.mxu0 %v6582_v33  ;;  %4630 = vmatprep.subr.bf16.mxu1 %v6587_v34  ;;  %v6780_v33 = vld [vmem:[#allocation2 + $0x1c4] ss:$72 sps:$4 sm:$0xff]   ;;  %v6784_v34 = vld [vmem:[#allocation2 + $0x38] ss:$72 sps:$4 sm:$0xff]  }
 0x166   :  { %5017 = vmatprep.subr.bf16.mxu0 %v6590_v35  ;;  %v6786_v35 = vld [vmem:[#allocation2 + $0xc8] ss:$72 sps:$4 sm:$0xff]  }
 0x168   :  { %4631 = vmatpush1.bf16.msra.mxu1 %v6585_v40  ;;  %v6788_v40 = vld [vmem:[#allocation2 + $0x158] ss:$72 sps:$4 sm:$0xff]  }
 0x169   :  { %5018 = vmatpush1.bf16.msra.mxu0 %v6588_v41  ;;  %4632 = vmatprep.subr.bf16.mxu1 %v6593_v42  ;;  %v6790_v41 = vld [vmem:[#allocation2 + $0x1e8] ss:$72 sps:$4 sm:$0xff]  }
 0x16a   :  { %5019 = vmatprep.subr.bf16.mxu0 %v6596_v43  ;;  %v6657_v42 = vld [vmem:[#allocation5 + $0x4e0] ss:$8 sps:$4 sm:$0xff]  }
 0x16b   :  { %v6660_v43 = vld [vmem:[#allocation5 + $0xde0] ss:$8 sps:$4 sm:$0xff]  }
 0x16c   :  { %4633 = vmatpush1.bf16.msra.mxu1 %v6591_v36  ;;  %v6665_v36 = vld [vmem:[#allocation5 + $0x4f4] ss:$8 sps:$4 sm:$0xff]  }
 0x16d   :  { %5020 = vmatpush1.bf16.msra.mxu0 %v6594_v37  ;;  %4634 = vmatprep.subr.bf16.mxu1 %v6599_v44  ;;  %v7532_v37 = vrot.slane %v6777_v4, %v7369_v54  ;;  %v6668_v44 = vld [vmem:[#allocation5 + $0xdf4] ss:$8 sps:$4 sm:$0xff]   ;;  %v6717_v4 = vld [vmem:[#allocation5 + $0x560] ss:$8 sps:$4 sm:$0xff]  }
 0x16e   :  { %5021 = vmatprep.subr.bf16.mxu0 %v6602_v38  ;;  %v7535_v38 = vrot.slane %v6778_v27, %v7369_v54  ;;  %v6728_v27 = vld [vmem:[#allocation5 + $0xe74] ss:$8 sps:$4 sm:$0xff]  }
 0x170   :  { %4635 = vmatpush1.bf16.msra.mxu1 %v6597_v39  ;;  %v7538_v39 = vrot.slane %v6779_v29, %v7369_v54  ;;  %v6723_v29 = vld [vmem:[#allocation5 + $0x570] ss:$8 sps:$4 sm:$0xff]  }
 0x171   :  { %5022 = vmatpush1.bf16.msra.mxu0 %v6600_v46  ;;  %4636 = vmatprep.subr.bf16.mxu1 %v6605_v51  ;;  %v7541_v46 = vrot.slane %v6780_v33, %v7369_v54  ;;  %v7544_v51 = vrot.slane %v6784_v34, %v7369_v54  ;;  %v6726_v33 = vld [vmem:[#allocation5 + $0xe70] ss:$8 sps:$4 sm:$0xff]   ;;  %v6731_v34 = vld [vmem:[#allocation5 + $0x584] ss:$8 sps:$4 sm:$0xff]  }
 0x172   :  { %5023 = vmatprep.subr.bf16.mxu0 %v6608_v52  ;;  %v7547_v52 = vrot.slane %v6786_v35, %v7369_v54  ;;  %v6734_v35 = vld [vmem:[#allocation5 + $0xe84] ss:$8 sps:$4 sm:$0xff]  }
 0x174   :  { %4637 = vmatpush1.bf16.msra.mxu1 %v6603_v53  ;;  %v7550_v53 = vrot.slane %v6788_v40, %v7369_v54  ;;  %v6729_v40 = vld [vmem:[#allocation5 + $0x580] ss:$8 sps:$4 sm:$0xff]  }
 0x175   :  { %5024 = vmatpush1.bf16.msra.mxu0 %v6606_v55  ;;  %4638 = vmatprep.subr.bf16.mxu1 %v6611_v56  ;;  %v7553_v55 = vrot.slane %v6790_v41, %v7369_v54  ;;  %v6663_v56 = vld [vmem:[#allocation5 + $0x4f0] ss:$8 sps:$4 sm:$0xff]   ;;  %v6732_v41 = vld [vmem:[#allocation5 + $0xe80] ss:$8 sps:$4 sm:$0xff]  }
 0x176   :  { %5025 = vmatprep.subr.bf16.mxu0 %v6614_v57  ;;  %v6666_v57 = vld [vmem:[#allocation5 + $0xdf0] ss:$8 sps:$4 sm:$0xff]  }
 0x178   :  { %4639 = vmatpush1.bf16.msra.mxu1 %v6609_v58  ;;  %v334_v58 = vcombine.low %v7492_v30, %v7495_v32  ;;  %v661_v30 = vcombine.high %v7538_v39, %v7541_v46  ;;  %v515_v32 = vcombine.high %v7544_v51, %v7547_v52 }
 0x179   :  { %5026 = vmatpush1.bf16.msra.mxu0 %v6612_v59  ;;  %4640 = vmatprep.subr.bf16.mxu1 %v6617_v60  ;;  %v658_v59 = vcombine.low %v7498_v10, %v7501_v11  ;;  %v480_v60 = vcombine.low %v7504_v12, %v7507_v13  ;;  %v839_v10 = vcombine.high %v7550_v53, %v7553_v55  ;;  %v6677_v11 = vld [vmem:[#allocation5 + $0x500] ss:$8 sps:$4 sm:$0xff]  }
 0x17a   :  { %5027 = vmatprep.subr.bf16.mxu0 %v6620_v61  ;;  %v804_v61 = vcombine.low %v7510_v14, %v7513_v15  ;;  %v6684_v12 = vld [vmem:[#allocation5 + $0xe00] ss:$8 sps:$4 sm:$0xff]   ;;  %v6689_v15 = vld [vmem:[#allocation5 + $0x514] ss:$8 sps:$4 sm:$0xff]  }
 0x17b   :  { %v958_v13 = vpack.c.bf16 %v658_v59, %v334_v58  ;;  %v6741_v58 = vld [vmem:[#allocation5 + $0x5a0] ss:$8 sps:$4 sm:$0xff]  }
 0x17c   :  { %4641 = vmatpush1.bf16.msra.mxu1 %v6615_v62  ;;  %v6679_v62 = vld [vmem:[#allocation5 + $0x504] ss:$8 sps:$4 sm:$0xff]   ;;  %v976_v14 = vpack.c.bf16 %v804_v61, %v480_v60  ;;  %v6744_v59 = vld [vmem:[#allocation5 + $0xea0] ss:$8 sps:$4 sm:$0xff]   ;;  %v6749_v60 = vld [vmem:[#allocation5 + $0x5b4] ss:$8 sps:$4 sm:$0xff]  }
 0x17d   :  { %5028 = vmatpush1.bf16.msra.mxu0 %v6618_v2  ;;  %4642 = vmatprep.subr.bf16.mxu1 %v6623_v3  ;;  %v6686_v2 = vld [vmem:[#allocation5 + $0xe04] ss:$8 sps:$4 sm:$0xff]   ;;  %v337_v3 = vcombine.high %v7532_v37, %v7535_v38  ;;  %v6752_v61 = vld [vmem:[#allocation5 + $0xeb4] ss:$8 sps:$4 sm:$0xff]  }
 0x17e   :  { %5029 = vmatprep.subr.bf16.mxu0 %v6626_v5  ;;  %v6692_v5 = vld [vmem:[#allocation5 + $0xe14] ss:$8 sps:$4 sm:$0xff]  }
 0x180   :  { %4643 = vmatpush1.bf16.msra.mxu1 %v6621_v6  ;;  %v961_v6 = vpack.c.bf16 %v661_v30, %v337_v3  ;;  %v6755_v3 = vld [vmem:[#allocation5 + $0x5c4] ss:$8 sps:$4 sm:$0xff]  }
 0x181   :  { %5030 = vmatpush1.bf16.msra.mxu0 %v6624_v7  ;;  %4644 = vmatprep.subr.bf16.mxu1 %v6629_v8  ;;  %v979_v7 = vpack.c.bf16 %v839_v10, %v515_v32  ;;  %v6687_v8 = vld [vmem:[#allocation5 + $0x510] ss:$8 sps:$4 sm:$0xff]   ;;  %v6758_v30 = vld [vmem:[#allocation5 + $0xec4] ss:$8 sps:$4 sm:$0xff]   ;;  %v6753_v32 = vld [vmem:[#allocation5 + $0x5c0] ss:$8 sps:$4 sm:$0xff]  }
 0x182   :  { %5031 = vmatprep.subr.bf16.mxu0 %v6632_v9  ;;  %v6690_v9 = vld [vmem:[#allocation5 + $0xe10] ss:$8 sps:$4 sm:$0xff]   ;;  %v6756_v10 = vld [vmem:[#allocation5 + $0xec0] ss:$8 sps:$4 sm:$0xff]  }
 0x184   :  { %4645 = vmatpush1.bf16.msra.mxu1 %v6627_v28  ;;  %v6695_v28 = vld [vmem:[#allocation5 + $0x524] ss:$8 sps:$4 sm:$0xff]  }
 0x185   :  { %5032 = vmatpush1.bf16.msra.mxu0 %v6630_v31  ;;  %4646 = vmatprep.subr.bf16.mxu1 %v6635_v16  ;;  %v6698_v31 = vld [vmem:[#allocation5 + $0xe24] ss:$8 sps:$4 sm:$0xff]   ;;  %v6693_v16 = vld [vmem:[#allocation5 + $0x520] ss:$8 sps:$4 sm:$0xff]  }
 0x186   :  { %5033 = vmatprep.subr.bf16.mxu0 %v6638_v17  ;;  %v6696_v17 = vld [vmem:[#allocation5 + $0xe20] ss:$8 sps:$4 sm:$0xff]  }
 0x188   :  { %4647 = vmatpush1.bf16.msra.mxu1 %v6633_v18  ;;  %v6701_v18 = vld [vmem:[#allocation5 + $0x534] ss:$8 sps:$4 sm:$0xff]  }
 0x189   :  { %5034 = vmatpush1.bf16.msra.mxu0 %v6636_v19  ;;  %4648 = vmatprep.subr.bf16.mxu1 %v6641_v20  ;;  %v6704_v19 = vld [vmem:[#allocation5 + $0xe34] ss:$8 sps:$4 sm:$0xff]   ;;  %v6699_v20 = vld [vmem:[#allocation5 + $0x530] ss:$8 sps:$4 sm:$0xff]  }
 0x18a   :  { %5035 = vmatprep.subr.bf16.mxu0 %v6644_v21  ;;  %v6702_v21 = vld [vmem:[#allocation5 + $0xe30] ss:$8 sps:$4 sm:$0xff]  }
 0x18c   :  { %4649 = vmatpush1.bf16.msra.mxu1 %v6639_v22  ;;  %v6707_v22 = vld [vmem:[#allocation5 + $0x544] ss:$8 sps:$4 sm:$0xff]  }
 0x18d   :  { %5036 = vmatpush1.bf16.msra.mxu0 %v6642_v23  ;;  %4650 = vmatprep.subr.bf16.mxu1 %v6647_v24  ;;  %v6710_v23 = vld [vmem:[#allocation5 + $0xe44] ss:$8 sps:$4 sm:$0xff]   ;;  %v6705_v24 = vld [vmem:[#allocation5 + $0x540] ss:$8 sps:$4 sm:$0xff]  }
 0x18e   :  { %5037 = vmatprep.subr.bf16.mxu0 %v6650_v45  ;;  %v6708_v45 = vld [vmem:[#allocation5 + $0xe40] ss:$8 sps:$4 sm:$0xff]  }
 0x190   :  { %4651 = vmatpush1.bf16.msra.mxu1 %v6645_v47  ;;  %v6713_v47 = vld [vmem:[#allocation5 + $0x554] ss:$8 sps:$4 sm:$0xff]  }
 0x191   :  { %5038 = vmatpush1.bf16.msra.mxu0 %v6648_v49  ;;  %4652 = vmatprep.subr.bf16.mxu1 %v6653_v50  ;;  %v6716_v49 = vld [vmem:[#allocation5 + $0xe54] ss:$8 sps:$4 sm:$0xff]   ;;  %v6711_v50 = vld [vmem:[#allocation5 + $0x550] ss:$8 sps:$4 sm:$0xff]  }
 0x192   :  { %5039 = vmatprep.subr.bf16.mxu0 %v6656_v63  ;;  %v6714_v63 = vld [vmem:[#allocation5 + $0xe50] ss:$8 sps:$4 sm:$0xff]  }
 0x194   :  { %4653 = vmatpush1.bf16.msra.mxu1 %v6651_v0  ;;  %v6719_v0 = vld [vmem:[#allocation5 + $0x564] ss:$8 sps:$4 sm:$0xff]  }
 0x195   :  { %5040 = vmatpush1.bf16.msra.mxu0 %v6654_v1  ;;  %4654 = vmatprep.subr.bf16.mxu1 %v6659_v25  ;;  %v6722_v1 = vld [vmem:[#allocation5 + $0xe64] ss:$8 sps:$4 sm:$0xff]   ;;  %v6720_v25 = vld [vmem:[#allocation5 + $0xe60] ss:$8 sps:$4 sm:$0xff]  }
 0x196   :  { %5041 = vmatprep.subr.bf16.mxu0 %v6662_v26  ;;  %v6725_v26 = vld [vmem:[#allocation5 + $0x574] ss:$8 sps:$4 sm:$0xff]  }
 0x198   :  { %4655 = vmatpush1.bf16.msra.mxu1 %v6657_v42  ;;  %v6737_v42 = vld [vmem:[#allocation5 + $0x594] ss:$8 sps:$4 sm:$0xff]  }
 0x199   :  { %5042 = vmatpush1.bf16.msra.mxu0 %v6660_v43  ;;  %4656 = vmatprep.subr.bf16.mxu1 %v6665_v36  ;;  %v6740_v43 = vld [vmem:[#allocation5 + $0xe94] ss:$8 sps:$4 sm:$0xff]   ;;  %v6735_v36 = vld [vmem:[#allocation5 + $0x590] ss:$8 sps:$4 sm:$0xff]  }
 0x19a   :  { %5043 = vmatprep.subr.bf16.mxu0 %v6668_v44  ;;  %v6738_v44 = vld [vmem:[#allocation5 + $0xe90] ss:$8 sps:$4 sm:$0xff]  }
 0x19c   :  { %4657 = vmatpush1.bf16.msra.mxu1 %v6663_v56  ;;  %v6743_v56 = vld [vmem:[#allocation5 + $0x5a4] ss:$8 sps:$4 sm:$0xff]  }
 0x19d   :  { %5044 = vmatpush1.bf16.msra.mxu0 %v6666_v57  ;;  %4669 = vmatprep.subr.bf16.mxu1 %v6679_v62  ;;  %v6746_v57 = vld [vmem:[#allocation5 + $0xea4] ss:$8 sps:$4 sm:$0xff]   ;;  %v6747_v62 = vld [vmem:[#allocation5 + $0x5b0] ss:$8 sps:$4 sm:$0xff]  }
 0x19e   :  { %5056 = vmatprep.subr.bf16.mxu0 %v6686_v2  ;;  %v6750_v2 = vld [vmem:[#allocation5 + $0xeb0] ss:$8 sps:$4 sm:$0xff]  }
 0x19f   :  { %4659 = vmatmul.mubr.bf16.vlgmr.msra.gmra.mrb[0].mxu1 %v958_v13  ;;  %v6759_v13 = vld [vmem:[#allocation5 + $0x5d0] ss:$8 sps:$4 sm:$0xff]  }
 0x1a0   :  { %5046 = vmatmul.mubr.bf16.vlgmr.msra.gmra.mrb[0].mxu0 %v976_v14  ;;  %4670 = vmatpush1.bf16.msra.mxu1 %v6677_v11  ;;  %v6761_v11 = vld [vmem:[#allocation5 + $0x5d4] ss:$8 sps:$4 sm:$0xff]   ;;  %v6762_v14 = vld [vmem:[#allocation5 + $0xed0] ss:$8 sps:$4 sm:$0xff]  }
 0x1a1   :  { %5057 = vmatpush1.bf16.msra.mxu0 %v6684_v12  ;;  %4671 = vmatprep.subr.bf16.mxu1 %v6689_v15  ;;  %v6764_v12 = vld [vmem:[#allocation5 + $0xed4] ss:$8 sps:$4 sm:$0xff]   ;;  %v6885_v15 = vld [vmem:[#allocation2 + $0x18] ss:$72 sps:$4 sm:$0xff]  }
 0x1a2   :  { %5058 = vmatprep.subr.bf16.mxu0 %v6692_v5  ;;  %4701 = vmatprep.mubr.bf16.mxu1 %v961_v6  ;;  %v6767_v5 = vld [vmem:[#allocation5 + $0x5e4] ss:$8 sps:$4 sm:$0xff]  }
 0x1a3   :  { %5088 = vmatprep.mubr.bf16.mxu0 %v979_v7  ;;  %v6770_v6 = vld [vmem:[#allocation5 + $0xee4] ss:$8 sps:$4 sm:$0xff]   ;;  %v6887_v7 = vld [vmem:[#allocation2 + $0xa8] ss:$72 sps:$4 sm:$0xff]  }
 0x1a4   :  { %4672 = vmatpush1.bf16.msra.mxu1 %v6687_v8  ;;  %v6889_v8 = vld [vmem:[#allocation2 + $0x138] ss:$72 sps:$4 sm:$0xff]  }
 0x1a5   :  { %5059 = vmatpush1.bf16.msra.mxu0 %v6690_v9  ;;  %4673 = vmatprep.subr.bf16.mxu1 %v6695_v28  ;;  %v6891_v9 = vld [vmem:[#allocation2 + $0x1c8] ss:$72 sps:$4 sm:$0xff]   ;;  %v6896_v28 = vld [vmem:[#allocation2 + $0x3c] ss:$72 sps:$4 sm:$0xff]  }
 0x1a6   :  { %5060 = vmatprep.subr.bf16.mxu0 %v6698_v31  ;;  %v6897_v31 = vld [vmem:[#allocation2 + $0xcc] ss:$72 sps:$4 sm:$0xff]  }
 0x1a8   :  { %4674 = vmatpush1.bf16.msra.mxu1 %v6693_v16  ;;  %v6898_v16 = vld [vmem:[#allocation2 + $0x15c] ss:$72 sps:$4 sm:$0xff]  }
 0x1a9   :  { %5061 = vmatpush1.bf16.msra.mxu0 %v6696_v17  ;;  %4675 = vmatprep.subr.bf16.mxu1 %v6701_v18  ;;  %v6899_v17 = vld [vmem:[#allocation2 + $0x1ec] ss:$72 sps:$4 sm:$0xff]   ;;  %v6765_v18 = vld [vmem:[#allocation5 + $0x5e0] ss:$8 sps:$4 sm:$0xff]  }
 0x1aa   :  { %5062 = vmatprep.subr.bf16.mxu0 %v6704_v19  ;;  %v6768_v19 = vld [vmem:[#allocation5 + $0xee0] ss:$8 sps:$4 sm:$0xff]  }
 0x1ac   :  { %4676 = vmatpush1.bf16.msra.mxu1 %v6699_v20  ;;  %v6773_v20 = vld [vmem:[#allocation5 + $0x5f4] ss:$8 sps:$4 sm:$0xff]  }
 0x1ad   :  { %5063 = vmatpush1.bf16.msra.mxu0 %v6702_v21  ;;  %4677 = vmatprep.subr.bf16.mxu1 %v6707_v22  ;;  %v7572_v21 = vrot.slane %v6885_v15, %v7369_v54  ;;  %v6776_v22 = vld [vmem:[#allocation5 + $0xef4] ss:$8 sps:$4 sm:$0xff]   ;;  %v6825_v15 = vld [vmem:[#allocation5 + $0x660] ss:$8 sps:$4 sm:$0xff]  }
 0x1ae   :  { %5064 = vmatprep.subr.bf16.mxu0 %v6710_v23  ;;  %v7575_v23 = vrot.slane %v6887_v7, %v7369_v54  ;;  %v6836_v7 = vld [vmem:[#allocation5 + $0xf74] ss:$8 sps:$4 sm:$0xff]  }
 0x1b0   :  { %4678 = vmatpush1.bf16.msra.mxu1 %v6705_v24  ;;  %v7578_v24 = vrot.slane %v6889_v8, %v7369_v54  ;;  %v6831_v8 = vld [vmem:[#allocation5 + $0x670] ss:$8 sps:$4 sm:$0xff]  }
 0x1b1   :  { %5065 = vmatpush1.bf16.msra.mxu0 %v6708_v45  ;;  %4679 = vmatprep.subr.bf16.mxu1 %v6713_v47  ;;  %v7581_v45 = vrot.slane %v6891_v9, %v7369_v54  ;;  %v7584_v47 = vrot.slane %v6896_v28, %v7369_v54  ;;  %v6834_v9 = vld [vmem:[#allocation5 + $0xf70] ss:$8 sps:$4 sm:$0xff]   ;;  %v6839_v28 = vld [vmem:[#allocation5 + $0x684] ss:$8 sps:$4 sm:$0xff]  }
 0x1b2   :  { %5066 = vmatprep.subr.bf16.mxu0 %v6716_v49  ;;  %v7587_v49 = vrot.slane %v6897_v31, %v7369_v54  ;;  %v6842_v31 = vld [vmem:[#allocation5 + $0xf84] ss:$8 sps:$4 sm:$0xff]  }
 0x1b4   :  { %4680 = vmatpush1.bf16.msra.mxu1 %v6711_v50  ;;  %v7590_v50 = vrot.slane %v6898_v16, %v7369_v54  ;;  %v6837_v16 = vld [vmem:[#allocation5 + $0x680] ss:$8 sps:$4 sm:$0xff]  }
 0x1b5   :  { %5067 = vmatpush1.bf16.msra.mxu0 %v6714_v63  ;;  %4681 = vmatprep.subr.bf16.mxu1 %v6719_v0  ;;  %v7593_v63 = vrot.slane %v6899_v17, %v7369_v54  ;;  %v6771_v0 = vld [vmem:[#allocation5 + $0x5f0] ss:$8 sps:$4 sm:$0xff]   ;;  %v6840_v17 = vld [vmem:[#allocation5 + $0xf80] ss:$8 sps:$4 sm:$0xff]  }
 0x1b6   :  { %5068 = vmatprep.subr.bf16.mxu0 %v6722_v1  ;;  %v6774_v1 = vld [vmem:[#allocation5 + $0xef0] ss:$8 sps:$4 sm:$0xff]  }
 0x1b8   :  { %4682 = vmatpush1.bf16.msra.mxu1 %v6717_v4  ;;  %v336_v4 = vcombine.low %v7532_v37, %v7535_v38  ;;  %v695_v37 = vcombine.high %v7578_v24, %v7581_v45  ;;  %v517_v38 = vcombine.high %v7584_v47, %v7587_v49 }
 0x1b9   :  { %5069 = vmatpush1.bf16.msra.mxu0 %v6720_v25  ;;  %4683 = vmatprep.subr.bf16.mxu1 %v6725_v26  ;;  %v660_v25 = vcombine.low %v7538_v39, %v7541_v46  ;;  %v514_v26 = vcombine.low %v7544_v51, %v7547_v52  ;;  %v841_v39 = vcombine.high %v7590_v50, %v7593_v63  ;;  %v6781_v46 = vld [vmem:[#allocation5 + $0x600] ss:$8 sps:$4 sm:$0xff]  }
 0x1ba   :  { %5070 = vmatprep.subr.bf16.mxu0 %v6728_v27  ;;  %v838_v27 = vcombine.low %v7550_v53, %v7553_v55  ;;  %v6792_v51 = vld [vmem:[#allocation5 + $0xf00] ss:$8 sps:$4 sm:$0xff]   ;;  %v6797_v55 = vld [vmem:[#allocation5 + $0x614] ss:$8 sps:$4 sm:$0xff]  }
 0x1bb   :  { %v960_v52 = vpack.c.bf16 %v660_v25, %v336_v4  ;;  %v6849_v4 = vld [vmem:[#allocation5 + $0x6a0] ss:$8 sps:$4 sm:$0xff]  }
 0x1bc   :  { %4684 = vmatpush1.bf16.msra.mxu1 %v6723_v29  ;;  %v6783_v29 = vld [vmem:[#allocation5 + $0x604] ss:$8 sps:$4 sm:$0xff]   ;;  %v978_v53 = vpack.c.bf16 %v838_v27, %v514_v26  ;;  %v6852_v25 = vld [vmem:[#allocation5 + $0xfa0] ss:$8 sps:$4 sm:$0xff]   ;;  %v6857_v26 = vld [vmem:[#allocation5 + $0x6b4] ss:$8 sps:$4 sm:$0xff]  }
 0x1bd   :  { %5071 = vmatpush1.bf16.msra.mxu0 %v6726_v33  ;;  %4685 = vmatprep.subr.bf16.mxu1 %v6731_v34  ;;  %v6794_v33 = vld [vmem:[#allocation5 + $0xf04] ss:$8 sps:$4 sm:$0xff]   ;;  %v371_v34 = vcombine.high %v7572_v21, %v7575_v23  ;;  %v6860_v27 = vld [vmem:[#allocation5 + $0xfb4] ss:$8 sps:$4 sm:$0xff]  }
 0x1be   :  { %5072 = vmatprep.subr.bf16.mxu0 %v6734_v35  ;;  %v6800_v35 = vld [vmem:[#allocation5 + $0xf14] ss:$8 sps:$4 sm:$0xff]  }
 0x1c0   :  { %4686 = vmatpush1.bf16.msra.mxu1 %v6729_v40  ;;  %v963_v40 = vpack.c.bf16 %v695_v37, %v371_v34  ;;  %v6863_v34 = vld [vmem:[#allocation5 + $0x6c4] ss:$8 sps:$4 sm:$0xff]  }
 0x1c1   :  { %5073 = vmatpush1.bf16.msra.mxu0 %v6732_v41  ;;  %4687 = vmatprep.subr.bf16.mxu1 %v6737_v42  ;;  %v981_v41 = vpack.c.bf16 %v841_v39, %v517_v38  ;;  %v6795_v42 = vld [vmem:[#allocation5 + $0x610] ss:$8 sps:$4 sm:$0xff]   ;;  %v6866_v37 = vld [vmem:[#allocation5 + $0xfc4] ss:$8 sps:$4 sm:$0xff]   ;;  %v6861_v38 = vld [vmem:[#allocation5 + $0x6c0] ss:$8 sps:$4 sm:$0xff]  }
 0x1c2   :  { %5074 = vmatprep.subr.bf16.mxu0 %v6740_v43  ;;  %v6798_v43 = vld [vmem:[#allocation5 + $0xf10] ss:$8 sps:$4 sm:$0xff]   ;;  %v6864_v39 = vld [vmem:[#allocation5 + $0xfc0] ss:$8 sps:$4 sm:$0xff]  }
 0x1c4   :  { %4688 = vmatpush1.bf16.msra.mxu1 %v6735_v36  ;;  %v6803_v36 = vld [vmem:[#allocation5 + $0x624] ss:$8 sps:$4 sm:$0xff]  }
 0x1c5   :  { %5075 = vmatpush1.bf16.msra.mxu0 %v6738_v44  ;;  %4689 = vmatprep.subr.bf16.mxu1 %v6743_v56  ;;  %v6806_v44 = vld [vmem:[#allocation5 + $0xf24] ss:$8 sps:$4 sm:$0xff]   ;;  %v6801_v56 = vld [vmem:[#allocation5 + $0x620] ss:$8 sps:$4 sm:$0xff]  }
 0x1c6   :  { %5076 = vmatprep.subr.bf16.mxu0 %v6746_v57  ;;  %v6804_v57 = vld [vmem:[#allocation5 + $0xf20] ss:$8 sps:$4 sm:$0xff]  }
 0x1c8   :  { %4690 = vmatpush1.bf16.msra.mxu1 %v6741_v58  ;;  %v6809_v58 = vld [vmem:[#allocation5 + $0x634] ss:$8 sps:$4 sm:$0xff]  }
 0x1c9   :  { %5077 = vmatpush1.bf16.msra.mxu0 %v6744_v59  ;;  %4691 = vmatprep.subr.bf16.mxu1 %v6749_v60  ;;  %v6812_v59 = vld [vmem:[#allocation5 + $0xf34] ss:$8 sps:$4 sm:$0xff]   ;;  %v6807_v60 = vld [vmem:[#allocation5 + $0x630] ss:$8 sps:$4 sm:$0xff]  }
 0x1ca   :  { %5078 = vmatprep.subr.bf16.mxu0 %v6752_v61  ;;  %v6810_v61 = vld [vmem:[#allocation5 + $0xf30] ss:$8 sps:$4 sm:$0xff]  }
 0x1cc   :  { %4692 = vmatpush1.bf16.msra.mxu1 %v6747_v62  ;;  %v6815_v62 = vld [vmem:[#allocation5 + $0x644] ss:$8 sps:$4 sm:$0xff]  }
 0x1cd   :  { %5079 = vmatpush1.bf16.msra.mxu0 %v6750_v2  ;;  %4693 = vmatprep.subr.bf16.mxu1 %v6755_v3  ;;  %v6818_v2 = vld [vmem:[#allocation5 + $0xf44] ss:$8 sps:$4 sm:$0xff]   ;;  %v6813_v3 = vld [vmem:[#allocation5 + $0x640] ss:$8 sps:$4 sm:$0xff]  }
 0x1ce   :  { %5080 = vmatprep.subr.bf16.mxu0 %v6758_v30  ;;  %v6816_v30 = vld [vmem:[#allocation5 + $0xf40] ss:$8 sps:$4 sm:$0xff]  }
 0x1d0   :  { %4694 = vmatpush1.bf16.msra.mxu1 %v6753_v32  ;;  %v6821_v32 = vld [vmem:[#allocation5 + $0x654] ss:$8 sps:$4 sm:$0xff]  }
 0x1d1   :  { %5081 = vmatpush1.bf16.msra.mxu0 %v6756_v10  ;;  %4695 = vmatprep.subr.bf16.mxu1 %v6761_v11  ;;  %v6824_v10 = vld [vmem:[#allocation5 + $0xf54] ss:$8 sps:$4 sm:$0xff]   ;;  %v6819_v11 = vld [vmem:[#allocation5 + $0x650] ss:$8 sps:$4 sm:$0xff]  }
 0x1d2   :  { %5082 = vmatprep.subr.bf16.mxu0 %v6764_v12  ;;  %v6822_v12 = vld [vmem:[#allocation5 + $0xf50] ss:$8 sps:$4 sm:$0xff]  }
 0x1d4   :  { %4696 = vmatpush1.bf16.msra.mxu1 %v6759_v13  ;;  %v6827_v13 = vld [vmem:[#allocation5 + $0x664] ss:$8 sps:$4 sm:$0xff]  }
 0x1d5   :  { %5083 = vmatpush1.bf16.msra.mxu0 %v6762_v14  ;;  %4697 = vmatprep.subr.bf16.mxu1 %v6767_v5  ;;  %v6830_v14 = vld [vmem:[#allocation5 + $0xf64] ss:$8 sps:$4 sm:$0xff]   ;;  %v6828_v5 = vld [vmem:[#allocation5 + $0xf60] ss:$8 sps:$4 sm:$0xff]  }
 0x1d6   :  { %5084 = vmatprep.subr.bf16.mxu0 %v6770_v6  ;;  %v6833_v6 = vld [vmem:[#allocation5 + $0x674] ss:$8 sps:$4 sm:$0xff]  }
 0x1d8   :  { %4698 = vmatpush1.bf16.msra.mxu1 %v6765_v18  ;;  %v6845_v18 = vld [vmem:[#allocation5 + $0x694] ss:$8 sps:$4 sm:$0xff]  }
 0x1d9   :  { %5085 = vmatpush1.bf16.msra.mxu0 %v6768_v19  ;;  %4699 = vmatprep.subr.bf16.mxu1 %v6773_v20  ;;  %v6848_v19 = vld [vmem:[#allocation5 + $0xf94] ss:$8 sps:$4 sm:$0xff]   ;;  %v6843_v20 = vld [vmem:[#allocation5 + $0x690] ss:$8 sps:$4 sm:$0xff]  }
 0x1da   :  { %5086 = vmatprep.subr.bf16.mxu0 %v6776_v22  ;;  %v6846_v22 = vld [vmem:[#allocation5 + $0xf90] ss:$8 sps:$4 sm:$0xff]  }
 0x1dc   :  { %4700 = vmatpush1.bf16.msra.mxu1 %v6771_v0  ;;  %v6851_v0 = vld [vmem:[#allocation5 + $0x6a4] ss:$8 sps:$4 sm:$0xff]  }
 0x1dd   :  { %5087 = vmatpush1.bf16.msra.mxu0 %v6774_v1  ;;  %4712 = vmatprep.subr.bf16.mxu1 %v6783_v29  ;;  %v6854_v1 = vld [vmem:[#allocation5 + $0xfa4] ss:$8 sps:$4 sm:$0xff]   ;;  %v6855_v29 = vld [vmem:[#allocation5 + $0x6b0] ss:$8 sps:$4 sm:$0xff]  }
 0x1de   :  { %5099 = vmatprep.subr.bf16.mxu0 %v6794_v33  ;;  %v6858_v33 = vld [vmem:[#allocation5 + $0xfb0] ss:$8 sps:$4 sm:$0xff]  }
 0x1df   :  { %4702 = vmatmul.mubr.bf16.vlgmr.msra.gmra.mrb[0].mxu1 %v960_v52  ;;  %v6867_v52 = vld [vmem:[#allocation5 + $0x6d0] ss:$8 sps:$4 sm:$0xff]  }
 0x1e0   :  { %5089 = vmatmul.mubr.bf16.vlgmr.msra.gmra.mrb[0].mxu0 %v978_v53  ;;  %4713 = vmatpush1.bf16.msra.mxu1 %v6781_v46  ;;  %v6869_v46 = vld [vmem:[#allocation5 + $0x6d4] ss:$8 sps:$4 sm:$0xff]   ;;  %v6870_v53 = vld [vmem:[#allocation5 + $0xfd0] ss:$8 sps:$4 sm:$0xff]  }
 0x1e1   :  { %5100 = vmatpush1.bf16.msra.mxu0 %v6792_v51  ;;  %4714 = vmatprep.subr.bf16.mxu1 %v6797_v55  ;;  %v6872_v51 = vld [vmem:[#allocation5 + $0xfd4] ss:$8 sps:$4 sm:$0xff]  }
 0x1e2   :  { %5101 = vmatprep.subr.bf16.mxu0 %v6800_v35  ;;  %4744 = vmatprep.mubr.bf16.mxu1 %v963_v40  ;;  %v6993_v55 = vld [vmem:[#allocation2 + $0x1c] ss:$72 sps:$4 sm:$0xff]  }
 0x1e3   :  { %5131 = vmatprep.mubr.bf16.mxu0 %v981_v41  ;;  %v6875_v35 = vld [vmem:[#allocation5 + $0x6e4] ss:$8 sps:$4 sm:$0xff]  }
 0x1e4   :  { %4715 = vmatpush1.bf16.msra.mxu1 %v6795_v42  ;;  %v6878_v40 = vld [vmem:[#allocation5 + $0xfe4] ss:$8 sps:$4 sm:$0xff]  }
 0x1e5   :  { %5102 = vmatpush1.bf16.msra.mxu0 %v6798_v43  ;;  %4716 = vmatprep.subr.bf16.mxu1 %v6803_v36  ;;  %v6994_v41 = vld [vmem:[#allocation2 + $0xac] ss:$72 sps:$4 sm:$0xff]   ;;  %v6995_v42 = vld [vmem:[#allocation2 + $0x13c] ss:$72 sps:$4 sm:$0xff]   ;;  %v7000_v36 = vld [vmem:[#allocation2 + $0x40] ss:$72 sps:$4 sm:$0xff]  }
 0x1e6   :  { %5103 = vmatprep.subr.bf16.mxu0 %v6806_v44  ;;  %v6996_v43 = vld [vmem:[#allocation2 + $0x1cc] ss:$72 sps:$4 sm:$0xff]   ;;  %v7002_v44 = vld [vmem:[#allocation2 + $0xd0] ss:$72 sps:$4 sm:$0xff]  }
 0x1e8   :  { %4717 = vmatpush1.bf16.msra.mxu1 %v6801_v56  ;;  %v7004_v56 = vld [vmem:[#allocation2 + $0x160] ss:$72 sps:$4 sm:$0xff]  }
 0x1e9   :  { %5104 = vmatpush1.bf16.msra.mxu0 %v6804_v57  ;;  %4718 = vmatprep.subr.bf16.mxu1 %v6809_v58  ;;  %v7006_v57 = vld [vmem:[#allocation2 + $0x1f0] ss:$72 sps:$4 sm:$0xff]   ;;  %v6873_v58 = vld [vmem:[#allocation5 + $0x6e0] ss:$8 sps:$4 sm:$0xff]  }
 0x1ea   :  { %5105 = vmatprep.subr.bf16.mxu0 %v6812_v59  ;;  %v6876_v59 = vld [vmem:[#allocation5 + $0xfe0] ss:$8 sps:$4 sm:$0xff]  }
 0x1ec   :  { %4719 = vmatpush1.bf16.msra.mxu1 %v6807_v60  ;;  %v7612_v60 = vrot.slane %v6993_v55, %v7369_v54  ;;  %v6933_v55 = vld [vmem:[#allocation5 + $0x760] ss:$8 sps:$4 sm:$0xff]  }
 0x1ed   :  { %5106 = vmatpush1.bf16.msra.mxu0 %v6810_v61  ;;  %4720 = vmatprep.subr.bf16.mxu1 %v6815_v62  ;;  %v6881_v61 = vld [vmem:[#allocation5 + $0x6f4] ss:$8 sps:$4 sm:$0xff]  }
 0x1ee   :  { %5107 = vmatprep.subr.bf16.mxu0 %v6818_v2  ;;  %v6884_v62 = vld [vmem:[#allocation5 + $0xff4] ss:$8 sps:$4 sm:$0xff]   ;;  %v7615_v2 = vrot.slane %v6994_v41, %v7369_v54 }
 0x1ef   :  { %v6944_v41 = vld [vmem:[#allocation5 + $0x1074] ss:$8 sps:$4 sm:$0xff]  }
 0x1f0   :  { %4721 = vmatpush1.bf16.msra.mxu1 %v6813_v3  ;;  %v7618_v3 = vrot.slane %v6995_v42, %v7369_v54  ;;  %v6939_v42 = vld [vmem:[#allocation5 + $0x770] ss:$8 sps:$4 sm:$0xff]  }
 0x1f1   :  { %5108 = vmatpush1.bf16.msra.mxu0 %v6816_v30  ;;  %4722 = vmatprep.subr.bf16.mxu1 %v6821_v32  ;;  %v7621_v30 = vrot.slane %v6996_v43, %v7369_v54  ;;  %v7624_v32 = vrot.slane %v7000_v36, %v7369_v54  ;;  %v6942_v43 = vld [vmem:[#allocation5 + $0x1070] ss:$8 sps:$4 sm:$0xff]   ;;  %v6947_v36 = vld [vmem:[#allocation5 + $0x784] ss:$8 sps:$4 sm:$0xff]  }
 0x1f2   :  { %5109 = vmatprep.subr.bf16.mxu0 %v6824_v10  ;;  %v7627_v10 = vrot.slane %v7002_v44, %v7369_v54  ;;  %v6950_v44 = vld [vmem:[#allocation5 + $0x1084] ss:$8 sps:$4 sm:$0xff]  }
 0x1f4   :  { %4723 = vmatpush1.bf16.msra.mxu1 %v6819_v11  ;;  %v7630_v11 = vrot.slane %v7004_v56, %v7369_v54  ;;  %v6945_v56 = vld [vmem:[#allocation5 + $0x780] ss:$8 sps:$4 sm:$0xff]  }
 0x1f5   :  { %5110 = vmatpush1.bf16.msra.mxu0 %v6822_v12  ;;  %4724 = vmatprep.subr.bf16.mxu1 %v6827_v13  ;;  %v7633_v12 = vrot.slane %v7006_v57, %v7369_v54  ;;  %v370_v13 = vcombine.low %v7572_v21, %v7575_v23  ;;  %v373_v21 = vcombine.high %v7612_v60, %v7615_v2  ;;  %v6948_v57 = vld [vmem:[#allocation5 + $0x1080] ss:$8 sps:$4 sm:$0xff]  }
 0x1f6   :  { %5111 = vmatprep.subr.bf16.mxu0 %v6830_v14  ;;  %v694_v14 = vcombine.low %v7578_v24, %v7581_v45  ;;  %v697_v23 = vcombine.high %v7618_v3, %v7621_v30  ;;  %v551_v24 = vcombine.high %v7624_v32, %v7627_v10 }
 0x1f7   :  { %v875_v45 = vcombine.high %v7630_v11, %v7633_v12 }
 0x1f8   :  { %4725 = vmatpush1.bf16.msra.mxu1 %v6825_v15  ;;  %v516_v15 = vcombine.low %v7584_v47, %v7587_v49  ;;  %v962_v47 = vpack.c.bf16 %v694_v14, %v370_v13  ;;  %v6959_v13 = vld [vmem:[#allocation5 + $0x7a4] ss:$8 sps:$4 sm:$0xff]  }
 0x1f9   :  { %5112 = vmatpush1.bf16.msra.mxu0 %v6828_v5  ;;  %4726 = vmatprep.subr.bf16.mxu1 %v6833_v6  ;;  %v840_v5 = vcombine.low %v7590_v50, %v7593_v63  ;;  %v6879_v6 = vld [vmem:[#allocation5 + $0x6f0] ss:$8 sps:$4 sm:$0xff]   ;;  %v6893_v50 = vld [vmem:[#allocation5 + $0x700] ss:$8 sps:$4 sm:$0xff]   ;;  %v6962_v14 = vld [vmem:[#allocation5 + $0x10a4] ss:$8 sps:$4 sm:$0xff]  }
 0x1fa   :  { %5113 = vmatprep.subr.bf16.mxu0 %v6836_v7  ;;  %v6882_v7 = vld [vmem:[#allocation5 + $0xff0] ss:$8 sps:$4 sm:$0xff]   ;;  %v6900_v63 = vld [vmem:[#allocation5 + $0x1000] ss:$8 sps:$4 sm:$0xff]  }
 0x1fb   :  { %v980_v49 = vpack.c.bf16 %v840_v5, %v516_v15  ;;  %v6957_v15 = vld [vmem:[#allocation5 + $0x7a0] ss:$8 sps:$4 sm:$0xff]  }
 0x1fc   :  { %4727 = vmatpush1.bf16.msra.mxu1 %v6831_v8  ;;  %v6895_v8 = vld [vmem:[#allocation5 + $0x704] ss:$8 sps:$4 sm:$0xff]   ;;  %v6960_v5 = vld [vmem:[#allocation5 + $0x10a0] ss:$8 sps:$4 sm:$0xff]  }
 0x1fd   :  { %5114 = vmatpush1.bf16.msra.mxu0 %v6834_v9  ;;  %4728 = vmatprep.subr.bf16.mxu1 %v6839_v28  ;;  %v6902_v9 = vld [vmem:[#allocation5 + $0x1004] ss:$8 sps:$4 sm:$0xff]   ;;  %v6905_v28 = vld [vmem:[#allocation5 + $0x714] ss:$8 sps:$4 sm:$0xff]  }
 0x1fe   :  { %5115 = vmatprep.subr.bf16.mxu0 %v6842_v31  ;;  %v6908_v31 = vld [vmem:[#allocation5 + $0x1014] ss:$8 sps:$4 sm:$0xff]  }
 0x200   :  { %4729 = vmatpush1.bf16.msra.mxu1 %v6837_v16  ;;  %v965_v16 = vpack.c.bf16 %v697_v23, %v373_v21  ;;  %v6971_v21 = vld [vmem:[#allocation5 + $0x7c4] ss:$8 sps:$4 sm:$0xff]  }
 0x201   :  { %5116 = vmatpush1.bf16.msra.mxu0 %v6840_v17  ;;  %4730 = vmatprep.subr.bf16.mxu1 %v6845_v18  ;;  %v983_v17 = vpack.c.bf16 %v875_v45, %v551_v24  ;;  %v6903_v18 = vld [vmem:[#allocation5 + $0x710] ss:$8 sps:$4 sm:$0xff]   ;;  %v6974_v23 = vld [vmem:[#allocation5 + $0x10c4] ss:$8 sps:$4 sm:$0xff]   ;;  %v6969_v24 = vld [vmem:[#allocation5 + $0x7c0] ss:$8 sps:$4 sm:$0xff]  }
 0x202   :  { %5117 = vmatprep.subr.bf16.mxu0 %v6848_v19  ;;  %v6906_v19 = vld [vmem:[#allocation5 + $0x1010] ss:$8 sps:$4 sm:$0xff]   ;;  %v6972_v45 = vld [vmem:[#allocation5 + $0x10c0] ss:$8 sps:$4 sm:$0xff]  }
 0x204   :  { %4731 = vmatpush1.bf16.msra.mxu1 %v6843_v20  ;;  %v6911_v20 = vld [vmem:[#allocation5 + $0x724] ss:$8 sps:$4 sm:$0xff]  }
 0x205   :  { %5118 = vmatpush1.bf16.msra.mxu0 %v6846_v22  ;;  %4732 = vmatprep.subr.bf16.mxu1 %v6851_v0  ;;  %v6914_v22 = vld [vmem:[#allocation5 + $0x1024] ss:$8 sps:$4 sm:$0xff]   ;;  %v6909_v0 = vld [vmem:[#allocation5 + $0x720] ss:$8 sps:$4 sm:$0xff]  }
 0x206   :  { %5119 = vmatprep.subr.bf16.mxu0 %v6854_v1  ;;  %v6912_v1 = vld [vmem:[#allocation5 + $0x1020] ss:$8 sps:$4 sm:$0xff]  }
 0x208   :  { %4733 = vmatpush1.bf16.msra.mxu1 %v6849_v4  ;;  %v6917_v4 = vld [vmem:[#allocation5 + $0x734] ss:$8 sps:$4 sm:$0xff]  }
 0x209   :  { %5120 = vmatpush1.bf16.msra.mxu0 %v6852_v25  ;;  %4734 = vmatprep.subr.bf16.mxu1 %v6857_v26  ;;  %v6920_v25 = vld [vmem:[#allocation5 + $0x1034] ss:$8 sps:$4 sm:$0xff]   ;;  %v6915_v26 = vld [vmem:[#allocation5 + $0x730] ss:$8 sps:$4 sm:$0xff]  }
 0x20a   :  { %5121 = vmatprep.subr.bf16.mxu0 %v6860_v27  ;;  %v6918_v27 = vld [vmem:[#allocation5 + $0x1030] ss:$8 sps:$4 sm:$0xff]  }
 0x20c   :  { %4735 = vmatpush1.bf16.msra.mxu1 %v6855_v29  ;;  %v6923_v29 = vld [vmem:[#allocation5 + $0x744] ss:$8 sps:$4 sm:$0xff]  }
 0x20d   :  { %5122 = vmatpush1.bf16.msra.mxu0 %v6858_v33  ;;  %4736 = vmatprep.subr.bf16.mxu1 %v6863_v34  ;;  %v6926_v33 = vld [vmem:[#allocation5 + $0x1044] ss:$8 sps:$4 sm:$0xff]   ;;  %v6921_v34 = vld [vmem:[#allocation5 + $0x740] ss:$8 sps:$4 sm:$0xff]  }
 0x20e   :  { %5123 = vmatprep.subr.bf16.mxu0 %v6866_v37  ;;  %v6924_v37 = vld [vmem:[#allocation5 + $0x1040] ss:$8 sps:$4 sm:$0xff]  }
 0x210   :  { %4737 = vmatpush1.bf16.msra.mxu1 %v6861_v38  ;;  %v6929_v38 = vld [vmem:[#allocation5 + $0x754] ss:$8 sps:$4 sm:$0xff]  }
 0x211   :  { %5124 = vmatpush1.bf16.msra.mxu0 %v6864_v39  ;;  %4738 = vmatprep.subr.bf16.mxu1 %v6869_v46  ;;  %v6932_v39 = vld [vmem:[#allocation5 + $0x1054] ss:$8 sps:$4 sm:$0xff]   ;;  %v6927_v46 = vld [vmem:[#allocation5 + $0x750] ss:$8 sps:$4 sm:$0xff]  }
 0x212   :  { %5125 = vmatprep.subr.bf16.mxu0 %v6872_v51  ;;  %v6930_v51 = vld [vmem:[#allocation5 + $0x1050] ss:$8 sps:$4 sm:$0xff]  }
 0x214   :  { %4739 = vmatpush1.bf16.msra.mxu1 %v6867_v52  ;;  %v6935_v52 = vld [vmem:[#allocation5 + $0x764] ss:$8 sps:$4 sm:$0xff]  }
 0x215   :  { %5126 = vmatpush1.bf16.msra.mxu0 %v6870_v53  ;;  %4740 = vmatprep.subr.bf16.mxu1 %v6875_v35  ;;  %v6938_v53 = vld [vmem:[#allocation5 + $0x1064] ss:$8 sps:$4 sm:$0xff]   ;;  %v6936_v35 = vld [vmem:[#allocation5 + $0x1060] ss:$8 sps:$4 sm:$0xff]  }
 0x216   :  { %5127 = vmatprep.subr.bf16.mxu0 %v6878_v40  ;;  %v6941_v40 = vld [vmem:[#allocation5 + $0x774] ss:$8 sps:$4 sm:$0xff]  }
 0x218   :  { %4741 = vmatpush1.bf16.msra.mxu1 %v6873_v58  ;;  %v6953_v58 = vld [vmem:[#allocation5 + $0x794] ss:$8 sps:$4 sm:$0xff]  }
 0x219   :  { %5128 = vmatpush1.bf16.msra.mxu0 %v6876_v59  ;;  %4742 = vmatprep.subr.bf16.mxu1 %v6881_v61  ;;  %v6956_v59 = vld [vmem:[#allocation5 + $0x1094] ss:$8 sps:$4 sm:$0xff]   ;;  %v6951_v61 = vld [vmem:[#allocation5 + $0x790] ss:$8 sps:$4 sm:$0xff]  }
 0x21a   :  { %5129 = vmatprep.subr.bf16.mxu0 %v6884_v62  ;;  %v6954_v62 = vld [vmem:[#allocation5 + $0x1090] ss:$8 sps:$4 sm:$0xff]  }
 0x21c   :  { %4743 = vmatpush1.bf16.msra.mxu1 %v6879_v6  ;;  %v6965_v6 = vld [vmem:[#allocation5 + $0x7b4] ss:$8 sps:$4 sm:$0xff]  }
 0x21d   :  { %5130 = vmatpush1.bf16.msra.mxu0 %v6882_v7  ;;  %4755 = vmatprep.subr.bf16.mxu1 %v6895_v8  ;;  %v6968_v7 = vld [vmem:[#allocation5 + $0x10b4] ss:$8 sps:$4 sm:$0xff]   ;;  %v6963_v8 = vld [vmem:[#allocation5 + $0x7b0] ss:$8 sps:$4 sm:$0xff]  }
 0x21e   :  { %5142 = vmatprep.subr.bf16.mxu0 %v6902_v9  ;;  %v6966_v9 = vld [vmem:[#allocation5 + $0x10b0] ss:$8 sps:$4 sm:$0xff]  }
 0x21f   :  { %4745 = vmatmul.mubr.bf16.vlgmr.msra.gmra.mrb[0].mxu1 %v962_v47  ;;  %v6977_v47 = vld [vmem:[#allocation5 + $0x7d4] ss:$8 sps:$4 sm:$0xff]  }
 0x220   :  { %5132 = vmatmul.mubr.bf16.vlgmr.msra.gmra.mrb[0].mxu0 %v980_v49  ;;  %4756 = vmatpush1.bf16.msra.mxu1 %v6893_v50  ;;  %v6980_v49 = vld [vmem:[#allocation5 + $0x10d4] ss:$8 sps:$4 sm:$0xff]   ;;  %v6244_v50 = vld [vmem:[#allocation2 + $0x20] ss:$72 sps:$4 sm:$0xff]  }
 0x221   :  { %5143 = vmatpush1.bf16.msra.mxu0 %v6900_v63  ;;  %4757 = vmatprep.subr.bf16.mxu1 %v6905_v28  ;;  %v6247_v63 = vld [vmem:[#allocation2 + $0xb0] ss:$72 sps:$4 sm:$0xff]   ;;  %v6250_v28 = vld [vmem:[#allocation2 + $0x140] ss:$72 sps:$4 sm:$0xff]  }
 0x222   :  { %5144 = vmatprep.subr.bf16.mxu0 %v6908_v31  ;;  %4787 = vmatprep.mubr.bf16.mxu1 %v965_v16  ;;  %v6253_v31 = vld [vmem:[#allocation2 + $0x1d0] ss:$72 sps:$4 sm:$0xff]  }
 0x223   :  { %5174 = vmatprep.mubr.bf16.mxu0 %v983_v17  ;;  %v6975_v16 = vld [vmem:[#allocation5 + $0x7d0] ss:$8 sps:$4 sm:$0xff]  }
 0x224   :  { %4758 = vmatpush1.bf16.msra.mxu1 %v6903_v18  ;;  %v6978_v17 = vld [vmem:[#allocation5 + $0x10d0] ss:$8 sps:$4 sm:$0xff]   ;;  %v6983_v18 = vld [vmem:[#allocation5 + $0x7e4] ss:$8 sps:$4 sm:$0xff]  }
 0x225   :  { %5145 = vmatpush1.bf16.msra.mxu0 %v6906_v19  ;;  %4759 = vmatprep.subr.bf16.mxu1 %v6911_v20  ;;  %v6986_v19 = vld [vmem:[#allocation5 + $0x10e4] ss:$8 sps:$4 sm:$0xff]  }
 0x226   :  { %5146 = vmatprep.subr.bf16.mxu0 %v6914_v22  ;;  %v7101_v20 = vld [vmem:[#allocation2 + $0x44] ss:$72 sps:$4 sm:$0xff]   ;;  %v7102_v22 = vld [vmem:[#allocation2 + $0xd4] ss:$72 sps:$4 sm:$0xff]  }
 0x228   :  { %4760 = vmatpush1.bf16.msra.mxu1 %v6909_v0  ;;  %v7103_v0 = vld [vmem:[#allocation2 + $0x164] ss:$72 sps:$4 sm:$0xff]  }
 0x229   :  { %5147 = vmatpush1.bf16.msra.mxu0 %v6912_v1  ;;  %4761 = vmatprep.subr.bf16.mxu1 %v6917_v4  ;;  %v7104_v1 = vld [vmem:[#allocation2 + $0x1f4] ss:$72 sps:$4 sm:$0xff]   ;;  %v6981_v4 = vld [vmem:[#allocation5 + $0x7e0] ss:$8 sps:$4 sm:$0xff]  }
 0x22a   :  { %5148 = vmatprep.subr.bf16.mxu0 %v6920_v25  ;;  %v6984_v25 = vld [vmem:[#allocation5 + $0x10e0] ss:$8 sps:$4 sm:$0xff]  }
 0x22c   :  { %4762 = vmatpush1.bf16.msra.mxu1 %v6915_v26  ;;  %v7652_v26 = vrot.slane %v6244_v50, %v7369_v54  ;;  %v7046_v50 = vld [vmem:[#allocation5 + $0x1164] ss:$8 sps:$4 sm:$0xff]  }
 0x22d   :  { %5149 = vmatpush1.bf16.msra.mxu0 %v6918_v27  ;;  %4763 = vmatprep.subr.bf16.mxu1 %v6923_v29  ;;  %v6989_v27 = vld [vmem:[#allocation5 + $0x7f4] ss:$8 sps:$4 sm:$0xff]  }
 0x22e   :  { %5150 = vmatprep.subr.bf16.mxu0 %v6926_v33  ;;  %v6992_v29 = vld [vmem:[#allocation5 + $0x10f4] ss:$8 sps:$4 sm:$0xff]   ;;  %v7655_v33 = vrot.slane %v6247_v63, %v7369_v54  ;;  %v7041_v63 = vld [vmem:[#allocation5 + $0x860] ss:$8 sps:$4 sm:$0xff]  }
 0x230   :  { %4764 = vmatpush1.bf16.msra.mxu1 %v6921_v34  ;;  %v7658_v34 = vrot.slane %v6250_v28, %v7369_v54  ;;  %v7044_v28 = vld [vmem:[#allocation5 + $0x1160] ss:$8 sps:$4 sm:$0xff]  }
 0x231   :  { %5151 = vmatpush1.bf16.msra.mxu0 %v6924_v37  ;;  %4765 = vmatprep.subr.bf16.mxu1 %v6929_v38  ;;  %v7661_v37 = vrot.slane %v6253_v31, %v7369_v54  ;;  %v7664_v38 = vrot.slane %v7101_v20, %v7369_v54  ;;  %v7049_v31 = vld [vmem:[#allocation5 + $0x874] ss:$8 sps:$4 sm:$0xff]   ;;  %v7058_v20 = vld [vmem:[#allocation5 + $0x1184] ss:$8 sps:$4 sm:$0xff]  }
 0x232   :  { %5152 = vmatprep.subr.bf16.mxu0 %v6932_v39  ;;  %v7667_v39 = vrot.slane %v7102_v22, %v7369_v54  ;;  %v7053_v22 = vld [vmem:[#allocation5 + $0x880] ss:$8 sps:$4 sm:$0xff]  }
 0x234   :  { %4766 = vmatpush1.bf16.msra.mxu1 %v6927_v46  ;;  %v7670_v46 = vrot.slane %v7103_v0, %v7369_v54  ;;  %v7056_v0 = vld [vmem:[#allocation5 + $0x1180] ss:$8 sps:$4 sm:$0xff]  }
 0x235   :  { %5153 = vmatpush1.bf16.msra.mxu0 %v6930_v51  ;;  %4767 = vmatprep.subr.bf16.mxu1 %v6935_v52  ;;  %v7673_v51 = vrot.slane %v7104_v1, %v7369_v54  ;;  %v372_v52 = vcombine.low %v7612_v60, %v7615_v2  ;;  %v6999_v54 = vld [vmem:[#allocation5 + $0x804] ss:$8 sps:$4 sm:$0xff]   ;;  %v407_v60 = vcombine.high %v7652_v26, %v7655_v33  ;;  %v7061_v1 = vld [vmem:[#allocation5 + $0x894] ss:$8 sps:$4 sm:$0xff]  }
 0x236   :  { %5154 = vmatprep.subr.bf16.mxu0 %v6938_v53  ;;  %v696_v53 = vcombine.low %v7618_v3, %v7621_v30  ;;  %v731_v2 = vcombine.high %v7658_v34, %v7661_v37  ;;  %v553_v3 = vcombine.high %v7664_v38, %v7667_v39 }
 0x237   :  { %v877_v30 = vcombine.high %v7670_v46, %v7673_v51 }
 0x238   :  { %4768 = vmatpush1.bf16.msra.mxu1 %v6933_v55  ;;  %v550_v55 = vcombine.low %v7624_v32, %v7627_v10  ;;  %v964_v32 = vpack.c.bf16 %v696_v53, %v372_v52  ;;  %v7070_v52 = vld [vmem:[#allocation5 + $0x11a4] ss:$8 sps:$4 sm:$0xff]   ;;  %v7065_v53 = vld [vmem:[#allocation5 + $0x8a0] ss:$8 sps:$4 sm:$0xff]  }
 0x239   :  { %5155 = vmatpush1.bf16.msra.mxu0 %v6936_v35  ;;  %4769 = vmatprep.subr.bf16.mxu1 %v6941_v40  ;;  %v874_v35 = vcombine.low %v7630_v11, %v7633_v12  ;;  %v6987_v40 = vld [vmem:[#allocation5 + $0x7f0] ss:$8 sps:$4 sm:$0xff]   ;;  %v6997_v11 = vld [vmem:[#allocation5 + $0x800] ss:$8 sps:$4 sm:$0xff]  }
 0x23a   :  { %5156 = vmatprep.subr.bf16.mxu0 %v6944_v41  ;;  %v6990_v41 = vld [vmem:[#allocation5 + $0x10f0] ss:$8 sps:$4 sm:$0xff]   ;;  %v7008_v12 = vld [vmem:[#allocation5 + $0x1100] ss:$8 sps:$4 sm:$0xff]  }
 0x23b   :  { %v982_v10 = vpack.c.bf16 %v874_v35, %v550_v55  ;;  %v7068_v55 = vld [vmem:[#allocation5 + $0x11a0] ss:$8 sps:$4 sm:$0xff]   ;;  %v7073_v35 = vld [vmem:[#allocation5 + $0x8b4] ss:$8 sps:$4 sm:$0xff]  }
 0x23c   :  { %4770 = vmatpush1.bf16.msra.mxu1 %v6939_v42  ;;  %v7010_v42 = vld [vmem:[#allocation5 + $0x1104] ss:$8 sps:$4 sm:$0xff]  }
 0x23d   :  { %5157 = vmatpush1.bf16.msra.mxu0 %v6942_v43  ;;  %4771 = vmatprep.subr.bf16.mxu1 %v6947_v36  ;;  %v7013_v43 = vld [vmem:[#allocation5 + $0x814] ss:$8 sps:$4 sm:$0xff]  }
 0x23e   :  { %5158 = vmatprep.subr.bf16.mxu0 %v6950_v44  ;;  %v7016_v36 = vld [vmem:[#allocation5 + $0x1114] ss:$8 sps:$4 sm:$0xff]   ;;  %v967_v44 = vpack.c.bf16 %v731_v2, %v407_v60  ;;  %v7082_v60 = vld [vmem:[#allocation5 + $0x11c4] ss:$8 sps:$4 sm:$0xff]   ;;  %v7077_v2 = vld [vmem:[#allocation5 + $0x8c0] ss:$8 sps:$4 sm:$0xff]  }
 0x240   :  { %4772 = vmatpush1.bf16.msra.mxu1 %v6945_v56  ;;  %v985_v56 = vpack.c.bf16 %v877_v30, %v553_v3  ;;  %v7080_v3 = vld [vmem:[#allocation5 + $0x11c0] ss:$8 sps:$4 sm:$0xff]   ;;  %v7085_v30 = vld [vmem:[#allocation5 + $0x8d4] ss:$8 sps:$4 sm:$0xff]  }
 0x241   :  { %5159 = vmatpush1.bf16.msra.mxu0 %v6948_v57  ;;  %4773 = vmatprep.subr.bf16.mxu1 %v6953_v58  ;;  %v7011_v57 = vld [vmem:[#allocation5 + $0x810] ss:$8 sps:$4 sm:$0xff]  }
 0x242   :  { %5160 = vmatprep.subr.bf16.mxu0 %v6956_v59  ;;  %v7014_v58 = vld [vmem:[#allocation5 + $0x1110] ss:$8 sps:$4 sm:$0xff]   ;;  %v7019_v59 = vld [vmem:[#allocation5 + $0x824] ss:$8 sps:$4 sm:$0xff]  }
 0x244   :  { %4774 = vmatpush1.bf16.msra.mxu1 %v6951_v61  ;;  %v7022_v61 = vld [vmem:[#allocation5 + $0x1124] ss:$8 sps:$4 sm:$0xff]  }
 0x245   :  { %5161 = vmatpush1.bf16.msra.mxu0 %v6954_v62  ;;  %4775 = vmatprep.subr.bf16.mxu1 %v6959_v13  ;;  %v7017_v62 = vld [vmem:[#allocation5 + $0x820] ss:$8 sps:$4 sm:$0xff]  }
 0x246   :  { %5162 = vmatprep.subr.bf16.mxu0 %v6962_v14  ;;  %v7020_v13 = vld [vmem:[#allocation5 + $0x1120] ss:$8 sps:$4 sm:$0xff]   ;;  %v7025_v14 = vld [vmem:[#allocation5 + $0x834] ss:$8 sps:$4 sm:$0xff]  }
 0x248   :  { %4776 = vmatpush1.bf16.msra.mxu1 %v6957_v15  ;;  %v7028_v15 = vld [vmem:[#allocation5 + $0x1134] ss:$8 sps:$4 sm:$0xff]  }
 0x249   :  { %5163 = vmatpush1.bf16.msra.mxu0 %v6960_v5  ;;  %4777 = vmatprep.subr.bf16.mxu1 %v6965_v6  ;;  %v7023_v5 = vld [vmem:[#allocation5 + $0x830] ss:$8 sps:$4 sm:$0xff]  }
 0x24a   :  { %5164 = vmatprep.subr.bf16.mxu0 %v6968_v7  ;;  %v7026_v6 = vld [vmem:[#allocation5 + $0x1130] ss:$8 sps:$4 sm:$0xff]   ;;  %v7031_v7 = vld [vmem:[#allocation5 + $0x844] ss:$8 sps:$4 sm:$0xff]  }
 0x24c   :  { %4778 = vmatpush1.bf16.msra.mxu1 %v6963_v8  ;;  %v7034_v8 = vld [vmem:[#allocation5 + $0x1144] ss:$8 sps:$4 sm:$0xff]  }
 0x24d   :  { %5165 = vmatpush1.bf16.msra.mxu0 %v6966_v9  ;;  %4779 = vmatprep.subr.bf16.mxu1 %v6971_v21  ;;  %v7029_v9 = vld [vmem:[#allocation5 + $0x840] ss:$8 sps:$4 sm:$0xff]  }
 0x24e   :  { %5166 = vmatprep.subr.bf16.mxu0 %v6974_v23  ;;  %v7032_v21 = vld [vmem:[#allocation5 + $0x1140] ss:$8 sps:$4 sm:$0xff]   ;;  %v7037_v23 = vld [vmem:[#allocation5 + $0x854] ss:$8 sps:$4 sm:$0xff]  }
 0x250   :  { %4780 = vmatpush1.bf16.msra.mxu1 %v6969_v24  ;;  %v7040_v24 = vld [vmem:[#allocation5 + $0x1154] ss:$8 sps:$4 sm:$0xff]  }
 0x251   :  { %5167 = vmatpush1.bf16.msra.mxu0 %v6972_v45  ;;  %4781 = vmatprep.subr.bf16.mxu1 %v6977_v47  ;;  %v7035_v45 = vld [vmem:[#allocation5 + $0x850] ss:$8 sps:$4 sm:$0xff]  }
 0x252   :  { %5168 = vmatprep.subr.bf16.mxu0 %v6980_v49  ;;  %v7038_v47 = vld [vmem:[#allocation5 + $0x1150] ss:$8 sps:$4 sm:$0xff]   ;;  %v7043_v49 = vld [vmem:[#allocation5 + $0x864] ss:$8 sps:$4 sm:$0xff]  }
 0x254   :  { %4782 = vmatpush1.bf16.msra.mxu1 %v6975_v16  ;;  %v7052_v16 = vld [vmem:[#allocation5 + $0x1174] ss:$8 sps:$4 sm:$0xff]  }
 0x255   :  { %5169 = vmatpush1.bf16.msra.mxu0 %v6978_v17  ;;  %4783 = vmatprep.subr.bf16.mxu1 %v6983_v18  ;;  %v7047_v17 = vld [vmem:[#allocation5 + $0x870] ss:$8 sps:$4 sm:$0xff]  }
 0x256   :  { %5170 = vmatprep.subr.bf16.mxu0 %v6986_v19  ;;  %v7050_v18 = vld [vmem:[#allocation5 + $0x1170] ss:$8 sps:$4 sm:$0xff]   ;;  %v7055_v19 = vld [vmem:[#allocation5 + $0x884] ss:$8 sps:$4 sm:$0xff]  }
 0x258   :  { %4784 = vmatpush1.bf16.msra.mxu1 %v6981_v4  ;;  %v7064_v4 = vld [vmem:[#allocation5 + $0x1194] ss:$8 sps:$4 sm:$0xff]  }
 0x259   :  { %5171 = vmatpush1.bf16.msra.mxu0 %v6984_v25  ;;  %4785 = vmatprep.subr.bf16.mxu1 %v6989_v27  ;;  %v7059_v25 = vld [vmem:[#allocation5 + $0x890] ss:$8 sps:$4 sm:$0xff]  }
 0x25a   :  { %5172 = vmatprep.subr.bf16.mxu0 %v6992_v29  ;;  %v7062_v27 = vld [vmem:[#allocation5 + $0x1190] ss:$8 sps:$4 sm:$0xff]   ;;  %v7067_v29 = vld [vmem:[#allocation5 + $0x8a4] ss:$8 sps:$4 sm:$0xff]  }
 0x25c   :  { %4786 = vmatpush1.bf16.msra.mxu1 %v6987_v40  ;;  %v7076_v40 = vld [vmem:[#allocation5 + $0x11b4] ss:$8 sps:$4 sm:$0xff]  }
 0x25d   :  { %5173 = vmatpush1.bf16.msra.mxu0 %v6990_v41  ;;  %4798 = vmatprep.subr.bf16.mxu1 %v6999_v54  ;;  %v7071_v41 = vld [vmem:[#allocation5 + $0x8b0] ss:$8 sps:$4 sm:$0xff]  }
 0x25e   :  { %5185 = vmatprep.subr.bf16.mxu0 %v7010_v42  ;;  %v7074_v54 = vld [vmem:[#allocation5 + $0x11b0] ss:$8 sps:$4 sm:$0xff]   ;;  %v7079_v42 = vld [vmem:[#allocation5 + $0x8c4] ss:$8 sps:$4 sm:$0xff]  }
 0x25f   :  { %4788 = vmatmul.mubr.bf16.vlgmr.msra.gmra.mrb[0].mxu1 %v964_v32  ;;  %v7088_v32 = vld [vmem:[#allocation5 + $0x11d4] ss:$8 sps:$4 sm:$0xff]  }
 0x260   :  { %5175 = vmatmul.mubr.bf16.vlgmr.msra.gmra.mrb[0].mxu0 %v982_v10  ;;  %4799 = vmatpush1.bf16.msra.mxu1 %v6997_v11  ;;  %v7083_v10 = vld [vmem:[#allocation5 + $0x8d0] ss:$8 sps:$4 sm:$0xff]  }
 0x261   :  { %5186 = vmatpush1.bf16.msra.mxu0 %v7008_v12  ;;  %4800 = vmatprep.subr.bf16.mxu1 %v7013_v43  ;;  %v7086_v11 = vld [vmem:[#allocation5 + $0x11d0] ss:$8 sps:$4 sm:$0xff]   ;;  %v7091_v12 = vld [vmem:[#allocation5 + $0x8e4] ss:$8 sps:$4 sm:$0xff]  }
 0x262   :  { %5187 = vmatprep.subr.bf16.mxu0 %v7016_v36  ;;  %4830 = vmatprep.mubr.bf16.mxu1 %v967_v44  ;;  %v7094_v43 = vld [vmem:[#allocation5 + $0x11e4] ss:$8 sps:$4 sm:$0xff]   ;;  %v7089_v36 = vld [vmem:[#allocation5 + $0x8e0] ss:$8 sps:$4 sm:$0xff]  }
 0x263   :  { %5217 = vmatprep.mubr.bf16.mxu0 %v985_v56  ;;  %v7092_v44 = vld [vmem:[#allocation5 + $0x11e0] ss:$8 sps:$4 sm:$0xff]   ;;  %v7097_v56 = vld [vmem:[#allocation5 + $0x8f4] ss:$8 sps:$4 sm:$0xff]  }
 0x264   :  { %4801 = vmatpush1.bf16.msra.mxu1 %v7011_v57  ;;  %v7100_v57 = vld [vmem:[#allocation5 + $0x11f4] ss:$8 sps:$4 sm:$0xff]  }
 0x265   :  { %5188 = vmatpush1.bf16.msra.mxu0 %v7014_v58  ;;  %4802 = vmatprep.subr.bf16.mxu1 %v7019_v59  ;;  %v406_v58 = vcombine.low %v7652_v26, %v7655_v33  ;;  %v730_v59 = vcombine.low %v7658_v34, %v7661_v37  ;;  %v7106_v26 = vld [vmem:[#allocation8] sm:$0xff]   ;;  %v7107_v33 = vld [vmem:[#allocation8 + $0x48] sm:$0xff]   ;;  %v7109_v37 = vld [vmem:[#allocation8 + $0x50] sm:$0xff]  }
 0x266   :  { %5189 = vmatprep.subr.bf16.mxu0 %v7022_v61  ;;  %v552_v61 = vcombine.low %v7664_v38, %v7667_v39  ;;  %v7108_v34 = vld [vmem:[#allocation8 + $0x8] sm:$0xff]   ;;  %v7110_v38 = vld [vmem:[#allocation8 + $0x10] sm:$0xff]   ;;  %v7111_v39 = vld [vmem:[#allocation8 + $0x58] sm:$0xff]  }
 0x268   :  { %4803 = vmatpush1.bf16.msra.mxu1 %v7017_v62  ;;  %v876_v62 = vcombine.low %v7670_v46, %v7673_v51  ;;  %v7112_v46 = vld [vmem:[#allocation8 + $0x18] sm:$0xff]   ;;  %v7113_v51 = vld [vmem:[#allocation8 + $0x60] sm:$0xff]  }
 0x269   :  { %5190 = vmatpush1.bf16.msra.mxu0 %v7020_v13  ;;  %4804 = vmatprep.subr.bf16.mxu1 %v7025_v14  ;;  %v7095_v13 = vld [vmem:[#allocation5 + $0x8f0] ss:$8 sps:$4 sm:$0xff]  }
 0x26a   :  { %5191 = vmatprep.subr.bf16.mxu0 %v7028_v15  ;;  %v7098_v14 = vld [vmem:[#allocation5 + $0x11f0] ss:$8 sps:$4 sm:$0xff]   ;;  %v7105_v15 = vld [vmem:[#allocation8 + $0x40] sm:$0xff]  }
 0x26c   :  { %4805 = vmatpush1.bf16.msra.mxu1 %v7023_v5  ;;  %v966_v5 = vpack.c.bf16 %v730_v59, %v406_v58 }
 0x26d   :  { %5192 = vmatpush1.bf16.msra.mxu0 %v7026_v6  ;;  %4806 = vmatprep.subr.bf16.mxu1 %v7031_v7  ;;  %v984_v6 = vpack.c.bf16 %v876_v62, %v552_v61  ;;  %v7114_v7 = vld [vmem:[#allocation8 + $0x20] sm:$0xff]  }
 0x26e   :  { %5193 = vmatprep.subr.bf16.mxu0 %v7034_v8  ;;  %v7115_v8 = vld [vmem:[#allocation8 + $0x68] sm:$0xff]  }
 0x270   :  { %4807 = vmatpush1.bf16.msra.mxu1 %v7029_v9  ;;  %v7116_v9 = vld [vmem:[#allocation8 + $0x28] sm:$0xff]  }
 0x271   :  { %5194 = vmatpush1.bf16.msra.mxu0 %v7032_v21  ;;  %4808 = vmatprep.subr.bf16.mxu1 %v7037_v23  ;;  %v7117_v21 = vld [vmem:[#allocation8 + $0x70] sm:$0xff]  }
 0x272   :  { %5195 = vmatprep.subr.bf16.mxu0 %v7040_v24  ;;  %v7118_v23 = vld [vmem:[#allocation8 + $0x30] sm:$0xff]   ;;  %v7119_v24 = vld [vmem:[#allocation8 + $0x78] sm:$0xff]  }
 0x274   :  { %4809 = vmatpush1.bf16.msra.mxu1 %v7035_v45  ;;  %v7120_v45 = vld [vmem:[#allocation8 + $0x38] sm:$0xff]  }
 0x275   :  { %5196 = vmatpush1.bf16.msra.mxu0 %v7038_v47  ;;  %4810 = vmatprep.subr.bf16.mxu1 %v7043_v49  ;;  %v1566_v47 = vsub.s32 0, %v7366_v48  ;;  %v1562_v49 = vld [vmem:[#allocation7] sm:$0x3] }
 0x276   :  { %5197 = vmatprep.subr.bf16.mxu0 %v7046_v50  ;;  %v1570_v50 = vsub.s32 1, %v7366_v48 }
 0x278   :  { %4811 = vmatpush1.bf16.msra.mxu1 %v7041_v63  ;;  %v1567_v63 = vrot.slane %v1562_v49, %v1566_v47 }
 0x279   :  { %5198 = vmatpush1.bf16.msra.mxu0 %v7044_v28  ;;  %4812 = vmatprep.subr.bf16.mxu1 %v7049_v31  ;;  %v1571_v28 = vrot.slane %v1562_v49, %v1570_v50 }
 0x27a   :  { %5199 = vmatprep.subr.bf16.mxu0 %v7052_v16 }
 0x27c   :  { %4813 = vmatpush1.bf16.msra.mxu1 %v7047_v17 }
 0x27d   :  { %5200 = vmatpush1.bf16.msra.mxu0 %v7050_v18  ;;  %4814 = vmatprep.subr.bf16.mxu1 %v7055_v19 }
 0x27e   :  { %5201 = vmatprep.subr.bf16.mxu0 %v7058_v20 }
 0x280   :  { %4815 = vmatpush1.bf16.msra.mxu1 %v7053_v22 }
 0x281   :  { %5202 = vmatpush1.bf16.msra.mxu0 %v7056_v0  ;;  %4816 = vmatprep.subr.bf16.mxu1 %v7061_v1 }
 0x282   :  { %5203 = vmatprep.subr.bf16.mxu0 %v7064_v4 }
 0x284   :  { %4817 = vmatpush1.bf16.msra.mxu1 %v7059_v25 }
 0x285   :  { %5204 = vmatpush1.bf16.msra.mxu0 %v7062_v27  ;;  %4818 = vmatprep.subr.bf16.mxu1 %v7067_v29 }
 0x286   :  { %5205 = vmatprep.subr.bf16.mxu0 %v7070_v52 }
 0x288   :  { %4819 = vmatpush1.bf16.msra.mxu1 %v7065_v53 }
 0x289   :  { %5206 = vmatpush1.bf16.msra.mxu0 %v7068_v55  ;;  %4820 = vmatprep.subr.bf16.mxu1 %v7073_v35 }
 0x28a   :  { %5207 = vmatprep.subr.bf16.mxu0 %v7076_v40 }
 0x28c   :  { %4821 = vmatpush1.bf16.msra.mxu1 %v7071_v41 }
 0x28d   :  { %5208 = vmatpush1.bf16.msra.mxu0 %v7074_v54  ;;  %4822 = vmatprep.subr.bf16.mxu1 %v7079_v42 }
 0x28e   :  { %5209 = vmatprep.subr.bf16.mxu0 %v7082_v60 }
 0x290   :  { %4823 = vmatpush1.bf16.msra.mxu1 %v7077_v2  ;;  %v6007_v2 = vld [vmem:[#allocation10] ss:$0 sm:$0xff] }
 0x291   :  { %5210 = vmatpush1.bf16.msra.mxu0 %v7080_v3  ;;  %4824 = vmatprep.subr.bf16.mxu1 %v7085_v30 }
 0x292   :  { %5211 = vmatprep.subr.bf16.mxu0 %v7088_v32 }
 0x294   :  { %4825 = vmatpush1.bf16.msra.mxu1 %v7083_v10 }
 0x295   :  { %5212 = vmatpush1.bf16.msra.mxu0 %v7086_v11  ;;  %4826 = vmatprep.subr.bf16.mxu1 %v7091_v12 }
 0x296   :  { %5213 = vmatprep.subr.bf16.mxu0 %v7094_v43 }
 0x298   :  { %4827 = vmatpush1.bf16.msra.mxu1 %v7089_v36 }
 0x299   :  { %5214 = vmatpush1.bf16.msra.mxu0 %v7092_v44  ;;  %4828 = vmatprep.subr.bf16.mxu1 %v7097_v56 }
 0x29a   :  { %5215 = vmatprep.subr.bf16.mxu0 %v7100_v57 }
 0x29c   :  { %4829 = vmatpush1.bf16.msra.mxu1 %v7095_v13 }
 0x29d   :  { %5216 = vmatpush1.bf16.msra.mxu0 %v7098_v14  ;;  %6024 = vmatprep.subr.bf16.mxu1 %v7105_v15 }
 0x29f   :  { %4831 = vmatmul.mubr.bf16.vlgmr.msra.gmra.mrb[0].mxu1 %v966_v5 }
 0x2a0   :  { %5218 = vmatmul.mubr.bf16.vlgmr.msra.gmra.mrb[0].mxu0 %v984_v6  ;;  %6025 = vmatpush3.bf16.msra.mxu1 %v7106_v26 }
 0x2a1   :  { %6026 = vmatprep.subr.bf16.mxu1 %v7107_v33 }
 0x2a4   :  { %6027 = vmatpush3.bf16.msra.mxu1 %v7108_v34 }
 0x2a5   :  { %6028 = vmatprep.subr.bf16.mxu1 %v7109_v37 }
 0x2a8   :  { %6029 = vmatpush3.bf16.msra.mxu1 %v7110_v38 }
 0x2a9   :  { %6030 = vmatprep.subr.bf16.mxu1 %v7111_v39 }
 0x2ac   :  { %6031 = vmatpush3.bf16.msra.mxu1 %v7112_v46 }
 0x2ad   :  { %6032 = vmatprep.subr.bf16.mxu1 %v7113_v51 }
 0x2b0   :  { %6033 = vmatpush3.bf16.msra.mxu1 %v7114_v7 }
 0x2b1   :  { %6034 = vmatprep.subr.bf16.mxu1 %v7115_v8 }
 0x2b4   :  { %6035 = vmatpush3.bf16.msra.mxu1 %v7116_v9 }
 0x2b5   :  { %6036 = vmatprep.subr.bf16.mxu1 %v7117_v21 }
 0x2b8   :  { %6037 = vmatpush3.bf16.msra.mxu1 %v7118_v23 }
 0x2b9   :  { %6038 = vmatprep.subr.bf16.mxu1 %v7119_v24 }
 0x2bc   :  { %6039 = vmatpush3.bf16.msra.mxu1 %v7120_v45 }
 0x372   :  { %v4832_v31 = vpop.f32.mrb[0].mxu1 }
 0x373   :  { %v5219_v16 = vpop.f32.mrb[0].mxu0  ;;  %v6046_v17 = vadd.f32 %v4832_v31, %v1567_v63  ;;  %v4834_v18 = vpop.f32.mrb[1].mxu1 }
 0x374   :  { %v5221_v19 = vpop.f32.mrb[1].mxu0  ;;  %v6048_v20 = vadd.f32 %v4834_v18, %v1571_v28  ;;  %v4836_v22 = vpop.f32.mrb[2].mxu1 }
 0x375   :  { %v5223_v0 = vpop.f32.mrb[2].mxu0  ;;  %v6047_v1 = vadd.f32 %v6046_v17, %v5219_v16  ;;  %v6050_v4 = vadd.f32 %v4836_v22, %v1567_v63  ;;  %v4838_v25 = vpop.f32.mrb[3].mxu1 }
 0x376   :  { %v5225_v27 = vpop.f32.mrb[3].mxu0  ;;  %v6049_v29 = vadd.f32 %v6048_v20, %v5221_v19  ;;  %v6052_v52 = vadd.f32 %v4838_v25, %v1571_v28 }
 0x377   :  { %v6051_v53 = vadd.f32 %v6050_v4, %v5223_v0  ;;  %v5228_v35 = vmax.f32 %v6047_v1, 0.0 }
 0x378   :  { %v6053_v55 = vadd.f32 %v6052_v52, %v5225_v27  ;;  %v5229_v40 = vmax.f32 %v6049_v29, 0.0 }
 0x379   :  { %v5230_v48 = vmax.f32 %v6051_v53, 0.0 }
 0x37a   :  { %v5231_v41 = vmax.f32 %v6053_v55, 0.0 }
 0x37b   :  { %v5232_v54 = vpack.c.bf16 %v5230_v48, %v5228_v35 }
 0x37c   :  { %v5233_v42 = vpack.c.bf16 %v5231_v41, %v5229_v40 }
 0x37e   :  { %5401 = vmatprep.mubr.bf16.mxu1 %v5233_v42 }
 0x37f   :  { %5402 = vmatmul.mubr.bf16.vlgmr.msra.gmra.mrb[4].mxu1 %v5232_v54 }
 0x452   :  { %v6040_v60 = vpop.f32.mrb[4].mxu1 }
 0x453   :  { %v6041_v3 = vpop.f32.mrb[5].mxu1 }
 0x454   :  { %v6042_v30 = vadd.f32 %v6041_v3, %v6040_v60  ;;  %v6043_v32 = vpop.f32.mrb[6].mxu1 }
 0x455   :  { %v6044_v10 = vpop.f32.mrb[7].mxu1 }
 0x456   :  { %v5404_v11 = vadd.f32 %v6042_v30, %v6007_v2  ;;  %v6045_v12 = vadd.f32 %v6044_v10, %v6043_v32 }
 0x458   :  { %5410 = vst [vmem:[#allocation11] sm:$0xff] %v5404_v11  ;;  %v5407_v43 = vadd.f32 %v6045_v12, %v6007_v2 }
 0x45a   :  { %5411 = vst [vmem:[#allocation11 + $0x8] sm:$0xff] %v5407_v43 }
 0x45b   :  { %5416 = vsyncadd [#allocation4], 224  ;;  %s7273_s4 = smov [#allocation11]  }
 0x45c   :  { %s5417_s30 = sshll.u32 %s7273_s4, 4  ;;  %s5418_s30 = int_to_ptr.vmem [resolvable:$true] %s5417_s30 }
 0x45d   :  { %s7231_s6 = scalar_lea.vmem %s5418_s30, 32  ;;  %s7235_s7 = scalar_lea.vmem %s5418_s30, 256 }
 0x45e   :  { %p7232_p12 = scmp.ne.s32.totalorder %s5418_s30, %s7231_s6  ;;  %p7236_p13 = scmp.lt.s32.totalorder %s5418_s30, %s5418_s30 }
 0x45f   :  { %p7237_p0 = scmp.lt.s32.totalorder %s7235_s7, %s7231_s6 }
 0x461   :  { %p7238_p1 = por %p7237_p0, %p7236_p13 }
 0x463   :  { %p7239_p2 = pnand %p7238_p1, %p7232_p12 }
 0x465   :  { %7242 = shalt.err (!%p7239_p2)
}
 0x466   :  { %s7243_s10 = scalar_lea.hbm %s7718_s5, 32 }
 0x467   :  { %p7244_p3 = scmp.ne.s32.totalorder %s7718_s5, %s7243_s10  ;;  %p7247_p4 = scmp.lt.u32.totalorder %s7243_s10, %s7718_s5 }
 0x469   :  { %p7249_p5 = pnand %p7247_p4, %p7244_p3 }
 0x46b   :  { %7252 = shalt.err (!%p7249_p5)
}
 0x46c   :  { %s7274_s15 = smov 32   ;;  %s7275_s16 = smov 2  }
 0x46d   :  { %5423 = dma.vmem_to_hbm [thread:$0]  %s5418_s30, 32, %s7718_s5, [#allocation4], %s7274_s15, %s7274_s15, %s7275_s16  }
 0x46e   :  { %7259 = dma.done.wait [#allocation4], 256  }
 0x46f   :  { %7260 = vsyncadd [#allocation4], 4294967040 }
 0x470   :  { %5427 = vsyncpa [#allocation3], 1 }
 0x471   :  { %5428 = vsyncpa [#allocation6], 1 }
 0x472   :  { %5429 = vsyncpa [#allocation9], 1 }
 0x473   :  { %5430 = vsyncpa [#allocation4], 1 }

</bundles_post_ra>
